<compile_context>
chip_gen: v6e
topology: v6e:2x2x1
jax: 0.10.0
libtpu: 0.0.40
codegen_flags: <defaults>
</compile_context>

<pallas_src>
import jax
import jax.numpy as jnp
from jax.experimental import pallas as pl
from jax.experimental.pallas import tpu as pltpu

SQRT1_2 = 0.7071067811865476
_GELU_C0 = 0.7978845608028654      # sqrt(2/pi)
_GELU_C1 = 0.044715

_MAX_PIX_TILE = 16384              # max pixels (lanes) per grid step
_LANE_QUANTUM = 512                # pixel-tile granularity (multiple of 128)


def _round_up(v, m):
    return (v + m - 1) // m * m


def _cdiv(a, b):
    return (a + b - 1) // b


def _compute_dtype():
    """bf16 elementwise on bf16-native VPU/EUP chips (v6e/v7x); f32 otherwise."""
    try:
        kind = jax.devices()[0].device_kind.lower()
    except Exception:
        return jnp.float32
    if "tpu" not in kind:
        return jnp.float32
    for old in ("v2", "v3", "v4", "v5"):
        if old in kind:
            return jnp.float32
    return jnp.bfloat16


_COMPUTE_DTYPE = _compute_dtype()


def _gelu_tanh(x):
    # tanh-form GELU; jnp.tanh lowers to the EUP (separate bundle slot), so the
    # VALU cost per vreg strip drops sharply vs the erf polynomial.
    u = _GELU_C0 * (x + _GELU_C1 * (x * x * x))
    return 0.5 * x * (1.0 + jnp.tanh(u))


def model_kernel(patches_ref, w_ref, b_ref, w10_ref, out_ref):
    cd = w_ref.dtype  # compute dtype (bf16 on v6e/v7x, f32 on v5e)

    # Resident weight slab: [w1 | w2*sqrt(1/2) | w9]  -> (17, 9+17+17)
    w1 = w_ref[:, 0:9]
    w2 = w_ref[:, 9:26]
    w9 = w_ref[:, 26:43]
    # Resident bias slab (f32): [b1 | b2*sqrt(1/2) | b9 | b10@row0] -> (17, 4)
    b1 = b_ref[:, 0:1]
    b2 = b_ref[:, 1:2]
    b9 = b_ref[:, 2:3]
    b10 = b_ref[0:1, 3:4]

    # conv (3x3, 1->17) as (17,9) @ (9,PT) patch matmul on the MXU.
    v1 = jnp.dot(w1, patches_ref[...], preferred_element_type=jnp.float32) + b1
    v6 = _gelu_tanh(v1.astype(cd))                       # v2..v6
    # conv2 (1x1, 17->17); sqrt(1/2) folded into w2/b2, so this is v9 directly.
    v9 = jnp.dot(w2, v6, preferred_element_type=jnp.float32) + b2
    # (the v12 -> conv3..conv8 branch never reaches the returned v32: dead code)
    v24 = _gelu_tanh(v9.astype(cd))                      # v20..v24
    # conv9 (1x1, ->17)   [in_channels repaired 2 -> 17, see header note]
    v25 = jnp.dot(w9, v24, preferred_element_type=jnp.float32) + b9
    v31 = _gelu_tanh(v25.astype(cd))                     # v26..v31
    # conv10 (1x1, 17->1): lane-dense (1, PT) store.
    out_ref[...] = jnp.dot(w10_ref[...], v31,
                           preferred_element_type=jnp.float32) + b10


def _im2col_3x3_t(x):
    """x: (N, 1, H, W) NCHW -> patches (9, N*Ho*Wo), 'valid' padding."""
    n, _, h, w = x.shape
    ho, wo = h - 2, w - 2
    cols = [x[:, 0, dy:dy + ho, dx:dx + wo] for dy in range(3) for dx in range(3)]
    return jnp.stack(cols, axis=0).reshape(9, n * ho * wo), (n, ho, wo)


def _choose_pixel_tile(p):
    n = max(1, _cdiv(p, _MAX_PIX_TILE))
    # Prefer >= 2 tiles when the problem is big enough so the ("parallel",)
    # grid axis can shard across both v7x TensorCores.
    if n == 1 and p >= 2 * _LANE_QUANTUM:
        n = 2
    return _round_up(_cdiv(p, n), _LANE_QUANTUM)


def _pack_params(params, cd):
    # Fold the sqrt(1/2) scale into conv2 (tiny host-side constants, not a
    # per-pixel wrapper op), pack weights / biases into resident slabs.
    w2 = params["w2"] * SQRT1_2
    b2 = params["b2"] * SQRT1_2
    w_slab = jnp.concatenate([params["w1"], w2, params["w9"]], axis=1).astype(cd)
    b10_col = jnp.zeros((17, 1), jnp.float32).at[0, 0].set(params["b10"][0, 0])
    b_slab = jnp.concatenate(
        [params["b1"], b2, params["b9"], b10_col], axis=1).astype(jnp.float32)
    w10 = params["w10"].astype(cd)
    return w_slab, b_slab, w10


@jax.jit
def model_forward(x, params):
    cd = _COMPUTE_DTYPE
    patches, (n, ho, wo) = _im2col_3x3_t(x)
    p = patches.shape[1]
    pt = _choose_pixel_tile(p)
    n_tiles = _cdiv(p, pt)
    p_pad = n_tiles * pt
    if p_pad != p:
        patches = jnp.pad(patches, ((0, 0), (0, p_pad - p)))
    patches = patches.astype(cd)

    w_slab, b_slab, w10 = _pack_params(params, cd)

    def resident(shape):
        # Constant block index -> stays VMEM-resident across the grid.
        return pl.BlockSpec(shape, lambda i: (0, 0))

    out = pl.pallas_call(
        model_kernel,
        out_shape=jax.ShapeDtypeStruct((1, p_pad), jnp.float32),
        grid=(n_tiles,),
        in_specs=[
            pl.BlockSpec((9, pt), lambda i: (0, i)),   # patches: tiled over pixels
            resident((17, 43)),                        # packed weights
            resident((17, 4)),                         # packed biases (+ b10)
            resident((1, 17)),                         # w10
        ],
        out_specs=pl.BlockSpec((1, pt), lambda i: (0, i)),
        compiler_params=pltpu.CompilerParams(
            dimension_semantics=("parallel",)),
    )(patches, w_slab, b_slab, w10)

    # back to NCHW: (N, 1, Ho, Wo)
    return out[0, :p].reshape(n, ho, wo)[:, None, :, :]


def init_params(key):
    ks = jax.random.split(key, 8)
    # conv  : torch weight (17, 1, 3, 3) -> (Cout, kh*kw) = (17, 9)
    w1 = jax.random.normal(ks[0], (17, 1, 3, 3), jnp.float32) * 0.1
    b1 = jax.random.normal(ks[1], (17,), jnp.float32) * 0.05
    # conv2 : (17, 17, 1, 1) -> (Cout, Cin)
    w2 = jax.random.normal(ks[2], (17, 17, 1, 1), jnp.float32) * 0.1
    b2 = jax.random.normal(ks[3], (17,), jnp.float32) * 0.05
    # conv9 : adjusted to (17, 17, 1, 1) so the written forward is valid
    w9 = jax.random.normal(ks[4], (17, 17, 1, 1), jnp.float32) * 0.1
    b9 = jax.random.normal(ks[5], (17,), jnp.float32) * 0.05
    # conv10: (1, 17, 1, 1) -> (1, 17)
    w10 = jax.random.normal(ks[6], (1, 17, 1, 1), jnp.float32) * 0.1
    b10 = jax.random.normal(ks[7], (1,), jnp.float32) * 0.05
    return {
        "w1": w1.reshape(17, 9),
        "b1": b1.reshape(17, 1),
        "w2": w2.reshape(17, 17),
        "b2": b2.reshape(17, 1),
        "w9": w9.reshape(17, 17),
        "b9": b9.reshape(17, 1),
        "w10": w10.reshape(1, 17),
        "b10": b10.reshape(1, 1),
    }


def _reference_forward(x, params):
    # Pure-JAX reference (exact erf-GELU, f32) mirroring the PyTorch graph.
    patches, (n, ho, wo) = _im2col_3x3_t(x)
    erf = jax.scipy.special.erf
    gelu = lambda v: (v * 0.5) * (erf(v * SQRT1_2) + 1.0)
    v1 = params["w1"] @ patches + params["b1"]
    v7 = params["w2"] @ gelu(v1) + params["b2"]
    v9 = v7 * SQRT1_2
    v25 = params["w9"] @ gelu(v9) + params["b9"]
    v32 = params["w10"] @ gelu(v25) + params["b10"]
    return v32[0].reshape(n, ho, wo)[:, None, :, :]


if __name__ == "__main__":
    key = jax.random.PRNGKey(0)
    k_x, k_p = jax.random.split(key)
    # small NCHW input consistent with the module (Cin=1, 3x3 valid conv)
    x = jax.random.normal(k_x, (2, 1, 34, 34), jnp.float32)   # -> output (2, 1, 32, 32)
    params = init_params(k_p)

    y = model_forward(x, params)
    jax.block_until_ready(y)
    assert y.shape == (2, 1, 32, 32) and y.dtype == jnp.float32

    # Loose tolerance: tanh-GELU approximation (+ bf16 chain on v6e/v7x).
    y_ref = _reference_forward(x, params)
    err = float(jnp.max(jnp.abs(y - y_ref)))
    assert err < 2e-2, f"max abs err {err}"

    print("KERNEL_OK")
</pallas_src>

<mosaic_0001>
module attributes {stable_mosaic.version = 11 : i64} {
  func.func @model_kernel(%arg0: i32, %arg1: memref<9x1024xf32, #tpu.memory_space<vmem>>, %arg2: memref<17x43xf32, #tpu.memory_space<vmem>>, %arg3: memref<17x4xf32, #tpu.memory_space<vmem>>, %arg4: memref<1x17xf32, #tpu.memory_space<vmem>>, %arg5: memref<1x1024xf32, #tpu.memory_space<vmem>>) attributes {dimension_semantics = [#tpu.dimension_semantics<parallel>], iteration_bounds = array<i64: 2>, scalar_prefetch = 0 : i64, scratch_operands = 0 : i64, tpu.core_type = #tpu.core_type<tc>, window_params = [{transform_indices = @transform_0, window_bounds = array<i64: 9, 1024>}, {pipeline_mode = #tpu.pipeline_mode<synchronous>, transform_indices = @transform_1, window_bounds = array<i64: 17, 43>}, {pipeline_mode = #tpu.pipeline_mode<synchronous>, transform_indices = @transform_2, window_bounds = array<i64: 17, 4>}, {pipeline_mode = #tpu.pipeline_mode<synchronous>, transform_indices = @transform_3, window_bounds = array<i64: 1, 17>}, {transform_indices = @transform_4, window_bounds = array<i64: 1, 1024>}]} {
    %c0 = arith.constant 0 : index
    %c0_0 = arith.constant 0 : index
    %0 = vector.load %arg2[%c0, %c0_0] : memref<17x43xf32, #tpu.memory_space<vmem>>, vector<17x9xf32>
    %c0_1 = arith.constant 0 : index
    %c9 = arith.constant 9 : index
    %1 = vector.load %arg2[%c0_1, %c9] : memref<17x43xf32, #tpu.memory_space<vmem>>, vector<17x17xf32>
    %c0_2 = arith.constant 0 : index
    %c26 = arith.constant 26 : index
    %2 = vector.load %arg2[%c0_2, %c26] : memref<17x43xf32, #tpu.memory_space<vmem>>, vector<17x17xf32>
    %c0_3 = arith.constant 0 : index
    %c0_4 = arith.constant 0 : index
    %3 = vector.load %arg3[%c0_3, %c0_4] : memref<17x4xf32, #tpu.memory_space<vmem>>, vector<17x1xf32>
    %c0_5 = arith.constant 0 : index
    %c1 = arith.constant 1 : index
    %4 = vector.load %arg3[%c0_5, %c1] : memref<17x4xf32, #tpu.memory_space<vmem>>, vector<17x1xf32>
    %c0_6 = arith.constant 0 : index
    %c2 = arith.constant 2 : index
    %5 = vector.load %arg3[%c0_6, %c2] : memref<17x4xf32, #tpu.memory_space<vmem>>, vector<17x1xf32>
    %c0_7 = arith.constant 0 : index
    %c3 = arith.constant 3 : index
    %6 = vector.load %arg3[%c0_7, %c3] : memref<17x4xf32, #tpu.memory_space<vmem>>, vector<1x1xf32>
    %c0_8 = arith.constant 0 : index
    %c0_9 = arith.constant 0 : index
    %7 = vector.load %arg1[%c0_8, %c0_9] : memref<9x1024xf32, #tpu.memory_space<vmem>>, vector<9x1024xf32>
    %cst = arith.constant dense<0.000000e+00> : vector<17x1024xf32>
    %8 = tpu.matmul %0, %7, %cst {dimension_numbers = #tpu.dot_dimension_numbers<[1], [0], [0], [1], [0, 0, 1, 1], [], []>} : vector<17x9xf32>, vector<9x1024xf32>, vector<17x1024xf32> -> vector<17x1024xf32>
    %9 = vector.broadcast %3 : vector<17x1xf32> to vector<17x1024xf32>
    %10 = arith.addf %8, %9 : vector<17x1024xf32>
    %11 = arith.mulf %10, %10 : vector<17x1024xf32>
    %12 = arith.mulf %11, %10 : vector<17x1024xf32>
    %cst_10 = arith.constant 4.471500e-02 : f32
    %13 = vector.broadcast %cst_10 : f32 to vector<17x1024xf32>
    %14 = arith.mulf %13, %12 : vector<17x1024xf32>
    %15 = arith.addf %10, %14 : vector<17x1024xf32>
    %cst_11 = arith.constant 0.797884583 : f32
    %16 = vector.broadcast %cst_11 : f32 to vector<17x1024xf32>
    %17 = arith.mulf %16, %15 : vector<17x1024xf32>
    %cst_12 = arith.constant 5.000000e-01 : f32
    %18 = vector.broadcast %cst_12 : f32 to vector<17x1024xf32>
    %19 = arith.mulf %18, %10 : vector<17x1024xf32>
    %20 = math.tanh %17 : vector<17x1024xf32>
    %cst_13 = arith.constant 1.000000e+00 : f32
    %21 = vector.broadcast %cst_13 : f32 to vector<17x1024xf32>
    %22 = arith.addf %21, %20 : vector<17x1024xf32>
    %23 = arith.mulf %19, %22 : vector<17x1024xf32>
    %cst_14 = arith.constant dense<0.000000e+00> : vector<17x1024xf32>
    %24 = tpu.matmul %1, %23, %cst_14 {dimension_numbers = #tpu.dot_dimension_numbers<[1], [0], [0], [1], [0, 0, 1, 1], [], []>} : vector<17x17xf32>, vector<17x1024xf32>, vector<17x1024xf32> -> vector<17x1024xf32>
    %25 = vector.broadcast %4 : vector<17x1xf32> to vector<17x1024xf32>
    %26 = arith.addf %24, %25 : vector<17x1024xf32>
    %27 = arith.mulf %26, %26 : vector<17x1024xf32>
    %28 = arith.mulf %27, %26 : vector<17x1024xf32>
    %cst_15 = arith.constant 4.471500e-02 : f32
    %29 = vector.broadcast %cst_15 : f32 to vector<17x1024xf32>
    %30 = arith.mulf %29, %28 : vector<17x1024xf32>
    %31 = arith.addf %26, %30 : vector<17x1024xf32>
    %cst_16 = arith.constant 0.797884583 : f32
    %32 = vector.broadcast %cst_16 : f32 to vector<17x1024xf32>
    %33 = arith.mulf %32, %31 : vector<17x1024xf32>
    %cst_17 = arith.constant 5.000000e-01 : f32
    %34 = vector.broadcast %cst_17 : f32 to vector<17x1024xf32>
    %35 = arith.mulf %34, %26 : vector<17x1024xf32>
    %36 = math.tanh %33 : vector<17x1024xf32>
    %cst_18 = arith.constant 1.000000e+00 : f32
    %37 = vector.broadcast %cst_18 : f32 to vector<17x1024xf32>
    %38 = arith.addf %37, %36 : vector<17x1024xf32>
    %39 = arith.mulf %35, %38 : vector<17x1024xf32>
    %cst_19 = arith.constant dense<0.000000e+00> : vector<17x1024xf32>
    %40 = tpu.matmul %2, %39, %cst_19 {dimension_numbers = #tpu.dot_dimension_numbers<[1], [0], [0], [1], [0, 0, 1, 1], [], []>} : vector<17x17xf32>, vector<17x1024xf32>, vector<17x1024xf32> -> vector<17x1024xf32>
    %41 = vector.broadcast %5 : vector<17x1xf32> to vector<17x1024xf32>
    %42 = arith.addf %40, %41 : vector<17x1024xf32>
    %43 = arith.mulf %42, %42 : vector<17x1024xf32>
    %44 = arith.mulf %43, %42 : vector<17x1024xf32>
    %cst_20 = arith.constant 4.471500e-02 : f32
    %45 = vector.broadcast %cst_20 : f32 to vector<17x1024xf32>
    %46 = arith.mulf %45, %44 : vector<17x1024xf32>
    %47 = arith.addf %42, %46 : vector<17x1024xf32>
    %cst_21 = arith.constant 0.797884583 : f32
    %48 = vector.broadcast %cst_21 : f32 to vector<17x1024xf32>
    %49 = arith.mulf %48, %47 : vector<17x1024xf32>
    %cst_22 = arith.constant 5.000000e-01 : f32
    %50 = vector.broadcast %cst_22 : f32 to vector<17x1024xf32>
    %51 = arith.mulf %50, %42 : vector<17x1024xf32>
    %52 = math.tanh %49 : vector<17x1024xf32>
    %cst_23 = arith.constant 1.000000e+00 : f32
    %53 = vector.broadcast %cst_23 : f32 to vector<17x1024xf32>
    %54 = arith.addf %53, %52 : vector<17x1024xf32>
    %55 = arith.mulf %51, %54 : vector<17x1024xf32>
    %c0_24 = arith.constant 0 : index
    %c0_25 = arith.constant 0 : index
    %56 = vector.load %arg4[%c0_24, %c0_25] : memref<1x17xf32, #tpu.memory_space<vmem>>, vector<1x17xf32>
    %cst_26 = arith.constant dense<0.000000e+00> : vector<1x1024xf32>
    %57 = tpu.matmul %56, %55, %cst_26 {dimension_numbers = #tpu.dot_dimension_numbers<[1], [0], [0], [1], [0, 0, 1, 1], [], []>} : vector<1x17xf32>, vector<17x1024xf32>, vector<1x1024xf32> -> vector<1x1024xf32>
    %58 = vector.broadcast %6 : vector<1x1xf32> to vector<1x1024xf32>
    %59 = arith.addf %57, %58 : vector<1x1024xf32>
    %c0_27 = arith.constant 0 : index
    %c0_28 = arith.constant 0 : index
    %60 = vector.load %arg5[%c0_27, %c0_28] : memref<1x1024xf32, #tpu.memory_space<vmem>>, vector<1x1024xf32>
    tpu.vector_store %arg5[%c0_27, %c0_28], %59 {strides = array<i32>} : memref<1x1024xf32, #tpu.memory_space<vmem>>, vector<1x1024xf32>,
    return
  }
  func.func @transform_0(%arg0: i32) -> (i32, i32) {
    %c0_i32 = arith.constant 0 : i32
    %c0_i32_0 = arith.constant 0 : i32
    return %c0_i32, %arg0 : i32, i32
  }
  func.func @transform_1(%arg0: i32) -> (i32, i32) {
    %c0_i32 = arith.constant 0 : i32
    %c0_i32_0 = arith.constant 0 : i32
    %c0_i32_1 = arith.constant 0 : i32
    return %c0_i32, %c0_i32_0 : i32, i32
  }
  func.func @transform_2(%arg0: i32) -> (i32, i32) {
    %c0_i32 = arith.constant 0 : i32
    %c0_i32_0 = arith.constant 0 : i32
    %c0_i32_1 = arith.constant 0 : i32
    return %c0_i32, %c0_i32_0 : i32, i32
  }
  func.func @transform_3(%arg0: i32) -> (i32, i32) {
    %c0_i32 = arith.constant 0 : i32
    %c0_i32_0 = arith.constant 0 : i32
    %c0_i32_1 = arith.constant 0 : i32
    return %c0_i32, %c0_i32_0 : i32, i32
  }
  func.func @transform_4(%arg0: i32) -> (i32, i32) {
    %c0_i32 = arith.constant 0 : i32
    %c0_i32_0 = arith.constant 0 : i32
    return %c0_i32, %arg0 : i32, i32
  }
}

</mosaic_0001>

<bundles_post_ra>
// kernel: squeeze.21
= control target key start
LH: loop header
LB: loop body
LE: loop exit
PB: predicated region body
PF: predicated region fallthrough
CT: control target
= control target key end

     0   :  { %vm4_vm0 = vcmask 261120   ;;  %s91_s10 = smov 96   ;;  %s121_s0 = inlined_call_operand.vmem [shape: f32[2048], index: 0, kind: input, shape index: {}]   ;;  %s122_s1 = inlined_call_operand.hbm [shape: f32[2,1,32,32], index: 1, kind: output, shape index: {}]  }
   0x1   :  { %v24_v0 = vld [vmem:[%s121_s0] sm:$0xff]   ;;  %v62_v1 = vld [vmem:[%s121_s0 + $0x8] sm:$0xff]   ;;  %s90_s0 = smov 64  }
   0x2   :  { %25 = vrot.lane.b32.xlu1 %v24_v0, %s90_s0  ;;  %12 = vrot.lane.b32.xlu0 %v24_v0, %s91_s10 }
   0x3   :  { %2 = vsyncpa [#allocation1], 0  ;;  %5 = vst.msk [vmem:[#allocation0] ss:$4 sm:$0xff] %vm4_vm0, %v24_v0   ;;  %s92_s11 = smov 32   ;;  %s93_s12 = smov [#allocation0]  }
   0x4   :  { %10 = vst.msk [vmem:[#allocation0 + $0x20] ss:$4 sm:$0xff] %vm4_vm0, %v62_v1   ;;  %s54_s13 = sshll.u32 %s93_s12, 4  ;;  %s55_s13 = int_to_ptr.vmem [resolvable:$true] %s54_s13 }
   0x5   :  { %s68_s14 = scalar_lea.vmem %s55_s13, 1024  ;;  %p73_p1 = scmp.lt.s32.totalorder %s55_s13, %s55_s13 }
   0x6   :  { %32 = vrot.lane.b32.xlu1 %v62_v1, %s90_s0  ;;  %19 = vrot.lane.b32.xlu0 %v62_v1, %s91_s10  ;;  %p69_p0 = scmp.ne.s32.totalorder %s55_s13, %s68_s14  ;;  %p74_p2 = scmp.lt.s32.totalorder %s68_s14, %s68_s14 }
   0x8   :  { %p75_p3 = por %p74_p2, %p73_p1 }
   0xa   :  { %45 = vrot.lane.b32.xlu1 %v62_v1, %s92_s11  ;;  %38 = vrot.lane.b32.xlu0 %v24_v0, %s92_s11  ;;  %p76_p4 = pnand %p75_p3, %p69_p0 }
  0x74   :  { %v26_v2 = vpop.permute.xlu1 %25   ;;  %v13_v3 = vpop.permute.xlu0 %12  }
  0x75   :  { %29 = vst.msk [vmem:[#allocation0 + $0x2] ss:$4 sm:$0xff] %vm4_vm0, %v26_v2   ;;  %16 = vst.msk [vmem:[#allocation0 + $0x1] ss:$4 sm:$0xff] %vm4_vm0, %v13_v3  }
  0x78   :  { %v33_v4 = vpop.permute.xlu1 %32   ;;  %v20_v5 = vpop.permute.xlu0 %19  }
  0x79   :  { %36 = vst.msk [vmem:[#allocation0 + $0x22] ss:$4 sm:$0xff] %vm4_vm0, %v33_v4   ;;  %23 = vst.msk [vmem:[#allocation0 + $0x21] ss:$4 sm:$0xff] %vm4_vm0, %v20_v5  }
  0x7c   :  { %v46_v6 = vpop.permute.xlu1 %45   ;;  %v39_v7 = vpop.permute.xlu0 %38  }
  0x7d   :  { %49 = vst.msk [vmem:[#allocation0 + $0x23] ss:$4 sm:$0xff] %vm4_vm0, %v46_v6   ;;  %42 = vst.msk [vmem:[#allocation0 + $0x3] ss:$4 sm:$0xff] %vm4_vm0, %v39_v7  }
  0x7e   :  { %79 = shalt.err (!%p76_p4)
}
  0x7f   :  { %57 = dma.vmem_to_hbm [thread:$0]  %s55_s13, 1024, %s122_s1, [#allocation1]  }
  0x80   :  { %88 = dma.done.wait [#allocation1], 1024  }
  0x81   :  { %89 = vsyncadd [#allocation1], 4294966272 }
  0x82   :  { %59 = vsyncpa [#allocation1], 1 }

// kernel: model_forward.1
= control target key start
LH: loop header
LB: loop body
LE: loop exit
PB: predicated region body
PF: predicated region fallthrough
CT: control target
= control target key end

     0   :  { %s2820_s15 = smov 0   ;;  %s2822_s16 = smov 0   ;;  %s3761_s0 = inlined_call_operand.vmem [shape: f32[9,2048], index: 0, kind: input, shape index: {}]   ;;  %s3762_s1 = inlined_call_operand.vmem [shape: f32[17,43], index: 1, kind: input, shape index: {}]   ;;  %s3763_s2 = inlined_call_operand.vmem [shape: f32[17,4], index: 2, kind: input, shape index: {}]   ;;  %s3764_s3 = inlined_call_operand.vmem [shape: f32[1,17], index: 3, kind: input, shape index: {}]   ;;  %s3765_s4 = inlined_call_operand.vmem [shape: f32[1,2048], index: 4, kind: output, shape index: {}]  }
   0x1   :  { %s2824_s17 = smov 0  }
   0x2 LB: > { %s2494_s18 = sadd.s32 4294967295, %s2785_s17   ;;  %s2837_s19 = sadd.s32 1, %s2785_s17   ;;  %s2785_s17 = sphi %s2824_s17, %s3768_s17   ;;  %s2781_s16 = sphi %s2822_s16, %s3767_s16   ;;  %s2777_s15 = sphi %s2820_s15, %s3766_s15  }
   0x3   : > { %s18_s20 = ssub.s32 %s2785_s17, %s2837_s19  ;;  %s21_s21 = sadd.s32 1, %s2781_s16 }
   0x4   : > { %p19_p0 = scmp.eq.s32.totalorder %s18_s20, 0  ;;  %p28_p1 = scmp.ne.s32.totalorder %s2781_s16, %s2777_s15 }
   0x5   : > { %p29_p2 = scmp.eq.s32.totalorder %s2785_s17, 0  ;;  %p2497_p4 = scmp.ge.s32.totalorder %s2785_s17, 2 }
   0x6   : > { %s2846_s22 = scalar_select %p19_p0, %s2781_s16, %s21_s21  }
   0x7   : > { %p30_p3 = por %p29_p2, %p28_p1  ;;  %152 = sbr.rel (%p2497_p4) target bundleno = 24 (0x18), region = 28 }
   0xc   : > { %155 = sbr.rel (!%p30_p3) target bundleno = 24 (0x18), region = 32  ;;  %s157_s23 = sand.u32 (%p30_p3), 1, %s2781_s16  }
   0xd   : > { %s2578_s24 = sshll.u32 (%p30_p3), %s2785_s17, 6  ;;  %s2498_s25 = sshll.u32 (%p30_p3), %s157_s23, 7 }
   0xe   : > { %s2854_s28 = scalar_lea.vmem (%p30_p3), %s3761_s0, %s2578_s24  ;;  %s159_s29 = scalar_lea.vmem (%p30_p3), [#allocation2], %s2498_s25 }
   0xf   : > { %v175_v0 = vld [vmem:[%s2854_s28] sm:$0xff] (%p30_p3)  ;;  %v177_v1 = vld [vmem:[%s2854_s28 + $0x8] sm:$0xff] (%p30_p3)  ;;  %v179_v2 = vld [vmem:[%s2854_s28 + $0x10] sm:$0xff] (%p30_p3) }
  0x10   : > { %176 = vst [vmem:[%s159_s29] sm:$0xff] (%p30_p3), %v175_v0  ;;  %178 = vst [vmem:[%s159_s29 + $0x8] sm:$0xff] (%p30_p3), %v177_v1  ;;  %v181_v3 = vld [vmem:[%s2854_s28 + $0x18] sm:$0xff] (%p30_p3)  ;;  %v183_v4 = vld [vmem:[%s2854_s28 + $0x20] sm:$0xff] (%p30_p3) }
  0x11   : > { %180 = vst [vmem:[%s159_s29 + $0x10] sm:$0xff] %v179_v2  ;;  %v185_v5 = vld [vmem:[%s2854_s28 + $0x28] sm:$0xff]  ;;  %182 = vst [vmem:[%s159_s29 + $0x18] sm:$0xff] %v181_v3  ;;  %v187_v6 = vld [vmem:[%s2854_s28 + $0x30] sm:$0xff] }
  0x12   : > { %184 = vst [vmem:[%s159_s29 + $0x20] sm:$0xff] %v183_v4  ;;  %186 = vst [vmem:[%s159_s29 + $0x28] sm:$0xff] %v185_v5  ;;  %v189_v7 = vld [vmem:[%s2854_s28 + $0x38] sm:$0xff]  ;;  %v191_v8 = vld [vmem:[%s2854_s28 + $0x80] sm:$0xff] }
  0x13   : > { %188 = vst [vmem:[%s159_s29 + $0x30] sm:$0xff] %v187_v6  ;;  %190 = vst [vmem:[%s159_s29 + $0x38] sm:$0xff] %v189_v7  ;;  %v193_v9 = vld [vmem:[%s2854_s28 + $0x88] sm:$0xff]  ;;  %v195_v10 = vld [vmem:[%s2854_s28 + $0x90] sm:$0xff] }
  0x14   : > { %192 = vst [vmem:[%s159_s29 + $0x40] sm:$0xff] %v191_v8  ;;  %v197_v11 = vld [vmem:[%s2854_s28 + $0x98] sm:$0xff]  ;;  %194 = vst [vmem:[%s159_s29 + $0x48] sm:$0xff] %v193_v9  ;;  %v199_v12 = vld [vmem:[%s2854_s28 + $0xa0] sm:$0xff] }
  0x15   : > { %196 = vst [vmem:[%s159_s29 + $0x50] sm:$0xff] %v195_v10  ;;  %198 = vst [vmem:[%s159_s29 + $0x58] sm:$0xff] %v197_v11  ;;  %v201_v13 = vld [vmem:[%s2854_s28 + $0xa8] sm:$0xff]  ;;  %v203_v14 = vld [vmem:[%s2854_s28 + $0xb0] sm:$0xff] }
  0x16   : > { %200 = vst [vmem:[%s159_s29 + $0x60] sm:$0xff] %v199_v12  ;;  %202 = vst [vmem:[%s159_s29 + $0x68] sm:$0xff] %v201_v13  ;;  %v205_v15 = vld [vmem:[%s2854_s28 + $0xb8] sm:$0xff] }
  0x17   : > { %204 = vst [vmem:[%s159_s29 + $0x70] sm:$0xff] %v203_v14  ;;  %206 = vst [vmem:[%s159_s29 + $0x78] sm:$0xff] %v205_v15 }
  0x18 PF: > { %p2501_p5 = scmp.ge.s32.totalorder %s2785_s17, 1  ;;  %p211_p6 = scmp.lt.s32.totalorder %s2785_s17, 3 }
  0x1a   : > { %p212_p7 = pnand %p2501_p5, %p211_p6 }
  0x1b   : > { %s218_s30 = sand.u32 (!%p212_p7), 1, %s2777_s15   ;;  %s2789_s24 = smov (!%p212_p7), 119  }
  0x1c   : > { %215 = sbr.rel (%p212_p7) target bundleno = 1031 (0x407), region = 55  ;;  %s2502_s5 = sshll.u32 (!%p212_p7), %s218_s30, 7 }
  0x1d   : > { %s2887_s10 = scalar_lea.vmem (!%p212_p7), [#allocation2], %s2502_s5  ;;  %s2791_s25 = smov (!%p212_p7), 102  }
  0x1e   : > { %s2503_s30 = sshll.u32 (!%p212_p7), %s2494_s18, 3 }
  0x1f   : > { %p244_p8 = scmp.lt.s32.totalorder (!%p212_p7), %s2503_s30, 15 }
  0x21   : > { %vm296_vm0 = vcmask 1040384   ;;  %v2787_v16 = vmov 0.0   ;;  %v2880_v17 = vld [vmem:[%s3763_s2 + $0x10] sm:$0x1]  ;;  %v2788_v18 = vmov 0   ;;  %v2885_v19 = vld [vmem:[%s3763_s2] sm:$0xff] }
  0x22   : > { %385 = vmatprep.mubr.f32.mxu0 %v2787_v16  ;;  %468 = vmatprep.mubr.f32.mxu1 %v2787_v16  ;;  %v264_v20 = vld [vmem:[%s2887_s10 + $0x48] sm:$0x1]  ;;  %v266_v21 = vld [vmem:[%s2887_s10 + $0x58] sm:$0x1]  ;;  %v263_v22 = vld [vmem:[%s2887_s10 + $0x40] sm:$0x1] }
  0x23   : > { %2612 = vset.pattern.permute.xlu1 %v2788_v18  ;;  %2611 = vset.pattern.permute.xlu0 %v2788_v18  ;;  %v265_v23 = vld [vmem:[%s2887_s10 + $0x50] sm:$0x1]  ;;  %v256_v24 = vld [vmem:[%s2887_s10 + $0x8] sm:$0xff]  ;;  %v258_v25 = vld [vmem:[%s2887_s10 + $0x18] sm:$0xff]  ;;  %vm286_vm1 = vcmask 72704   ;;  %v2790_v40 = vmov 1  }
  0x24   : > { %283 = vperm.xlu0 %2611, %v2880_v17   ;;  %273 = vperm.xlu1 %2612, %v2885_v19   ;;  %v255_v26 = vld [vmem:[%s2887_s10] sm:$0xff]  ;;  %v257_v27 = vld [vmem:[%s2887_s10 + $0x10] sm:$0xff]  ;;  %v268_v29 = vld [vmem:[%s2887_s10 + $0x68] sm:$0x1]  ;;  %vm887_vm2 = vcmask 138240   ;;  %s3770_s30 = smov (!%p244_p8, %s2503_s30), 15 }
  0x25   : > { %2504 = vmatprep.subr.msk.mxu0 %vm296_vm0, %v264_v20  ;;  %2509 = vmatprep.subr.msk.mxu1 %vm296_vm0, %v266_v21  ;;  %v248_v28 = vld [vmem:[%s3762_s1] sm:$0xff]  ;;  %v270_v30 = vld [vmem:[%s2887_s10 + $0x78] sm:$0x1]  ;;  %v269_v32 = vld [vmem:[%s2887_s10 + $0x70] sm:$0x1]  ;;  %s246_s18 = scalar_lea.vmem %s3765_s4, %s3770_s30 }
  0x26   : > { %2505 = vmatpush1.msk.msra.mxu0 %vm296_vm0, %v263_v22  ;;  %2510 = vmatpush1.msk.msra.mxu1 %vm296_vm0, %v265_v23  ;;  %v267_v31 = vld [vmem:[%s2887_s10 + $0x60] sm:$0x1]  ;;  %v249_v33 = vld [vmem:[%s3762_s1 + $0x8] sm:$0xff]  ;;  %v262_v35 = vld [vmem:[%s2887_s10 + $0x38] sm:$0xff] }
  0x27   : > { %351 = vmatprep.subr.mxu0 %v256_v24  ;;  %434 = vmatprep.subr.mxu1 %v258_v25  ;;  %v260_v34 = vld [vmem:[%s2887_s10 + $0x28] sm:$0xff]  ;;  %v259_v36 = vld [vmem:[%s2887_s10 + $0x20] sm:$0xff]  ;;  %v261_v37 = vld [vmem:[%s2887_s10 + $0x30] sm:$0xff] }
  0x28   : > { %352 = vmatpush1.msra.mxu0 %v255_v26  ;;  %435 = vmatpush1.msra.mxu1 %v257_v27  ;;  %v250_v38 = vld [vmem:[%s3762_s1 + $0x10] sm:$0x1]  ;;  %v2935_v39 = vld [vmem:[%s3763_s2 + $0x8] sm:$0xff] }
  0x29   : > { %2506 = vmatmul.mubr.msk.f32.vlgmr.msra.gmra.mxu0 %vm286_vm1, %v248_v28  ;;  %2511 = vmatmul.mubr.msk.f32.vlgmr.msra.gmra.mxu1 %vm286_vm1, %v248_v28 }
  0x2a   : > { %391 = vmatprep.mubr.f32.mxu0 %v2787_v16  ;;  %474 = vmatprep.mubr.f32.mxu1 %v2787_v16 }
  0x2b   : > { %2514 = vmatprep.subr.msk.mxu0 %vm296_vm0, %v268_v29  ;;  %2519 = vmatprep.subr.msk.mxu1 %vm296_vm0, %v270_v30 }
  0x2c   : > { %2515 = vmatpush1.msk.msra.mxu0 %vm296_vm0, %v267_v31  ;;  %2520 = vmatpush1.msk.msra.mxu1 %vm296_vm0, %v269_v32 }
  0x2d   : > { %2507 = vmatmul.mubr.msk.f32.gmra.mxu0 %vm286_vm1, %v249_v33  ;;  %2512 = vmatmul.mubr.msk.f32.gmra.mxu1 %vm286_vm1, %v249_v33 }
  0x2e   : > { %397 = vmatprep.mubr.f32.mxu0 %v2787_v16  ;;  %480 = vmatprep.mubr.f32.mxu1 %v2787_v16 }
  0x2f   : > { %517 = vmatprep.subr.mxu0 %v260_v34  ;;  %600 = vmatprep.subr.mxu1 %v262_v35 }
  0x30   : > { %518 = vmatpush1.msra.mxu0 %v259_v36  ;;  %601 = vmatpush1.msra.mxu1 %v261_v37 }
  0x31   : > { %2508 = vmatmul.mubr.msk.f32.gmra.mxu0 %vm286_vm1, %v250_v38  ;;  %2513 = vmatmul.mubr.msk.f32.gmra.mxu1 %vm286_vm1, %v250_v38 }
  0x32   : > { %551 = vmatprep.mubr.f32.mxu0 %v2787_v16  ;;  %634 = vmatprep.mubr.f32.mxu1 %v2787_v16 }
  0x33   : > { %278 = vperm.xlu0 %2611, %v2935_v39   ;;  %881 = vrot.lane.b32.xlu1 %v248_v28, %s2789_s24 }
  0x34   : > { %2614 = vset.pattern.permute.xlu1 %v2790_v40 }
  0x35   : > { %2516 = vmatmul.mubr.msk.f32.vlgmr.msra.gmra.mxu0 %vm286_vm1, %v248_v28  ;;  %2521 = vmatmul.mubr.msk.f32.vlgmr.msra.gmra.mxu1 %vm286_vm1, %v248_v28 }
  0x36   : > { %557 = vmatprep.mubr.f32.mxu0 %v2787_v16  ;;  %640 = vmatprep.mubr.f32.mxu1 %v2787_v16 }
  0x37   : > { %883 = vrot.lane.b32.xlu0 %v249_v33, %s2789_s24  ;;  %885 = vrot.lane.b32.xlu1 %v250_v38, %s2789_s24 }
  0x38   : > { %2613 = vset.pattern.permute.xlu0 %v2790_v40 }
  0x39   : > { %2517 = vmatmul.mubr.msk.f32.gmra.mxu0 %vm286_vm1, %v249_v33  ;;  %2522 = vmatmul.mubr.msk.f32.gmra.mxu1 %vm286_vm1, %v249_v33 }
  0x3a   : > { %563 = vmatprep.mubr.f32.mxu0 %v2787_v16  ;;  %646 = vmatprep.mubr.f32.mxu1 %v2787_v16 }
  0x3b   : > { %874 = vperm.xlu1 %2614, %v2935_v39   ;;  %878 = vperm.xlu0 %2613, %v2880_v17  }
  0x3d   : > { %2518 = vmatmul.mubr.msk.f32.gmra.mxu0 %vm286_vm1, %v250_v38  ;;  %2523 = vmatmul.mubr.msk.f32.gmra.mxu1 %vm286_vm1, %v250_v38 }
  0x3e   : > { %982 = vmatprep.mubr.f32.mxu0 %v2787_v16  ;;  %1065 = vmatprep.mubr.f32.mxu1 %v2787_v16 }
  0x3f   : > { %870 = vperm.xlu1 %2614, %v2885_v19   ;;  %1478 = vrot.lane.b32.xlu0 %v248_v28, %s2791_s25 }
  0x43   : > { %1480 = vrot.lane.b32.xlu1 %v249_v33, %s2791_s25  ;;  %1482 = vrot.lane.b32.xlu0 %v250_v38, %s2791_s25 }
  0x9f   : > { %v2957_v41 = vpop.permute.xlu0 %283  ;;  %v2959_v42 = vpop.permute.xlu1 %273 }
  0xae   : > { %v2969_v50 = vpop.permute.xlu0 %278 }
  0xe9   : > { %v387_v43 = vpop.f32.mrf.mxu0  ;;  %v470_v44 = vpop.f32.mrf.mxu1 }
  0xea   : > { %v2962_v45 = vadd.f32 %v387_v43, %v2959_v42  ;;  %v2965_v46 = vadd.f32 %v470_v44, %v2959_v42 }
  0xeb   : > { %v389_v47 = vpop.f32.mrf.mxu0  ;;  %v472_v48 = vpop.f32.mrf.mxu1 }
  0xec   : > { %v653_v49 = vmul.f32 %v2962_v45, %v2962_v45  ;;  %v655_v53 = vmul.f32 %v2965_v46, %v2965_v46  ;;  %v2974_v54 = vadd.f32 %v389_v47, %v2959_v42  ;;  %v2982_v62 = vadd.f32 %v472_v48, %v2959_v42 }
  0xed   : > { %v393_v51 = vpop.f32.mrf.mxu0  ;;  %v476_v52 = vpop.f32.mrf.mxu1 }
  0xee   : > { %v677_v57 = vmul.f32 %v653_v49, %v2962_v45  ;;  %v2978_v58 = vadd.f32 %v393_v51, %v2969_v50  ;;  %v679_v61 = vmul.f32 %v655_v53, %v2965_v46  ;;  %v2985_v63 = vadd.f32 %v476_v52, %v2969_v50 }
  0xef   : > { %v395_v55 = vpop.f32.mrf.mxu0  ;;  %v478_v56 = vpop.f32.mrf.mxu1  ;;  %v654_v0 = vmul.f32 %v2974_v54, %v2974_v54  ;;  %v656_v6 = vmul.f32 %v2982_v62, %v2982_v62 }
  0xf0   : > { %v701_v2 = vmul.f32 0.044715, %v677_v57  ;;  %v661_v3 = vmul.f32 %v2978_v58, %v2978_v58  ;;  %v703_v5 = vmul.f32 0.044715, %v679_v61  ;;  %v663_v7 = vmul.f32 %v2985_v63, %v2985_v63 }
  0xf1   : > { %v399_v59 = vpop.f32.mrf.mxu0  ;;  %v482_v60 = vpop.f32.mrf.mxu1  ;;  %v678_v10 = vmul.f32 %v654_v0, %v2974_v54  ;;  %v3002_v13 = vadd.f32 %v395_v55, %v2969_v50  ;;  %v680_v22 = vmul.f32 %v656_v6, %v2982_v62  ;;  %v3017_v27 = vadd.f32 %v478_v56, %v2969_v50 }
  0xf2   : > { %v2996_v8 = vadd.f32 %v399_v59, %v2957_v41  ;;  %v725_v11 = vadd.f32 %v701_v2, %v2962_v45  ;;  %v685_v12 = vmul.f32 %v661_v3, %v2978_v58  ;;  %v3007_v15 = vadd.f32 %v482_v60, %v2957_v41 }
  0xf3   : > { %v401_v1 = vpop.f32.mrf.mxu0  ;;  %v484_v4 = vpop.f32.mrf.mxu1  ;;  %v727_v21 = vadd.f32 %v703_v5, %v2965_v46  ;;  %v687_v23 = vmul.f32 %v663_v7, %v2985_v63  ;;  %v702_v26 = vmul.f32 0.044715, %v678_v10  ;;  %v662_v32 = vmul.f32 %v3002_v13, %v3002_v13 }
  0xf4   : > { %v669_v14 = vmul.f32 %v2996_v8, %v2996_v8  ;;  %v3010_v18 = vadd.f32 %v401_v1, %v2957_v41  ;;  %v671_v28 = vmul.f32 %v3007_v15, %v3007_v15  ;;  %v749_v30 = vmul.f32 0.7978846, %v725_v11 }
  0xf5   : > { %v553_v9 = vpop.f32.mrf.mxu0  ;;  %v636_v20 = vpop.f32.mrf.mxu1  ;;  %v709_v31 = vmul.f32 0.044715, %v685_v12  ;;  %v3028_v36 = vadd.f32 %v484_v4, %v2957_v41  ;;  %v751_v40 = vmul.f32 0.7978846, %v727_v21  ;;  %v704_v43 = vmul.f32 0.044715, %v680_v22 }
  0xf6   : > { %v693_v24 = vmul.f32 %v669_v14, %v2996_v8  ;;  %v670_v29 = vmul.f32 %v3010_v18, %v3010_v18  ;;  %v695_v34 = vmul.f32 %v671_v28, %v3007_v15  ;;  %v3031_v37 = vadd.f32 %v553_v9, %v2959_v42 }
  0xf7   : > { %v555_v25 = vpop.f32.mrf.mxu0  ;;  %v638_v38 = vpop.f32.mrf.mxu1  ;;  %v711_v44 = vmul.f32 0.044715, %v687_v23  ;;  %v664_v49 = vmul.f32 %v3017_v27, %v3017_v27  ;;  %v672_v53 = vmul.f32 %v3028_v36, %v3028_v36  ;;  %2619 = vtanh.f32 %v749_v30 }
  0xf8   : > { %v717_v33 = vmul.f32 0.044715, %v693_v24  ;;  %v694_v35 = vmul.f32 %v670_v29, %v3010_v18  ;;  %v719_v51 = vmul.f32 0.044715, %v695_v34  ;;  %v733_v55 = vadd.f32 %v709_v31, %v2978_v58 }
  0xf9   : > { %v559_v48 = vpop.f32.mrf.mxu0  ;;  %v657_v57 = vmul.f32 %v3031_v37, %v3031_v37  ;;  %v686_v59 = vmul.f32 %v662_v32, %v3002_v13  ;;  %v696_v0 = vmul.f32 %v672_v53, %v3028_v36  ;;  %v642_v1 = vpop.f32.mrf.mxu1  ;;  %2621 = vtanh.f32 %v751_v40 }
  0xfa   : > { %v741_v47 = vadd.f32 %v717_v33, %v2996_v8  ;;  %v718_v52 = vmul.f32 0.044715, %v694_v35  ;;  %v743_v60 = vadd.f32 %v719_v51, %v3007_v15  ;;  %v726_v2 = vadd.f32 %v702_v26, %v2974_v54 }
  0xfb   : > { %v728_v3 = vadd.f32 %v704_v43, %v2982_v62  ;;  %v735_v4 = vadd.f32 %v711_v44, %v2985_v63  ;;  %v561_v5 = vpop.f32.mrf.mxu0  ;;  %v688_v6 = vmul.f32 %v664_v49, %v3017_v27  ;;  %v720_v10 = vmul.f32 0.044715, %v696_v0  ;;  %v644_v23 = vpop.f32.mrf.mxu1 }
  0xfc   : > { %v765_v56 = vmul.f32 0.7978846, %v741_v47  ;;  %v742_v61 = vadd.f32 %v718_v52, %v3010_v18  ;;  %v767_v7 = vmul.f32 0.7978846, %v743_v60  ;;  %v757_v11 = vmul.f32 0.7978846, %v733_v55 }
  0xfd   : > { %v681_v12 = vmul.f32 %v657_v57, %v3031_v37  ;;  %v3051_v14 = vadd.f32 %v559_v48, %v2969_v50  ;;  %v710_v21 = vmul.f32 0.044715, %v686_v59  ;;  %v744_v22 = vadd.f32 %v720_v10, %v3028_v36  ;;  %v565_v29 = vpop.f32.mrf.mxu0  ;;  %v648_v44 = vpop.f32.mrf.mxu1 }
  0xfe   : > { %v766_v9 = vmul.f32 0.7978846, %v742_v61  ;;  %2623 = vtanh.f32 %v765_v56  ;;  %v3054_v24 = vmul.f32 0.7978846, %v726_v2  ;;  %v3057_v26 = vadd.f32 %v636_v20, %v2959_v42 }
  0xff   : > { %2625 = vtanh.f32 %v767_v7  ;;  %v3060_v28 = vadd.f32 %v555_v25, %v2959_v42  ;;  %v712_v30 = vmul.f32 0.044715, %v688_v6  ;;  %v768_v31 = vmul.f32 0.7978846, %v744_v22  ;;  %v567_v49 = vpop.f32.mrf.mxu0 }
 0x100   : > { %2627 = vtanh.f32 %v766_v9  ;;  %v3063_v32 = vadd.f32 %v638_v38, %v2959_v42  ;;  %v665_v33 = vmul.f32 %v3051_v14, %v3051_v14  ;;  %v3067_v34 = vmul.f32 0.7978846, %v728_v3 }
 0x101   : > { %2629 = vtanh.f32 %v757_v11  ;;  %v759_v35 = vmul.f32 0.7978846, %v735_v4  ;;  %v705_v40 = vmul.f32 0.044715, %v681_v12  ;;  %v734_v20 = vadd.f32 %v710_v21, %v3002_v13 }
 0x102   : > { %v3071_v43 = vmul.f32 0.5, %v2996_v8  ;;  %2631 = vtanh.f32 %v768_v31  ;;  %v689_v25 = vmul.f32 %v665_v33, %v3051_v14  ;;  %v3075_v42 = vmul.f32 0.5, %v3007_v15  ;;  %v650_v33 = vpop.f32.mrf.mxu1 }
 0x103   : > { %v659_v38 = vmul.f32 %v3057_v26, %v3057_v26  ;;  %v658_v47 = vmul.f32 %v3060_v28, %v3060_v28  ;;  %v3082_v48 = vadd.f32 %v561_v5, %v2969_v50  ;;  %v736_v8 = vadd.f32 %v712_v30, %v3017_v27 }
 0x104   : > { %v660_v51 = vmul.f32 %v3063_v32, %v3063_v32  ;;  %v3088_v52 = vadd.f32 %v642_v1, %v2969_v50  ;;  %v3091_v15 = vadd.f32 %v644_v23, %v2969_v50  ;;  %v729_v53 = vadd.f32 %v705_v40, %v3031_v37  ;;  %v3100_v59 = vpop.eup %2619 }
 0x105   : > { %v713_v55 = vmul.f32 0.044715, %v689_v25  ;;  %v3095_v56 = vadd.f32 %v565_v29, %v2957_v41  ;;  %v3098_v57 = vadd.f32 %v648_v44, %v2957_v41  ;;  %v3102_v60 = vmul.f32 0.7978846, %v734_v20 }
 0x106   : > { %v666_v61 = vmul.f32 %v3082_v48, %v3082_v48  ;;  %v668_v50 = vmul.f32 %v3091_v15, %v3091_v15  ;;  %v3109_v0 = vadd.f32 %v567_v49, %v2957_v41  ;;  %v790_v1 = vmul.f32 0.5, %v3010_v18  ;;  %v3116_v5 = vpop.eup %2621 }
 0x107   : > { %v683_v2 = vmul.f32 %v659_v38, %v3057_v26  ;;  %v682_v3 = vmul.f32 %v658_v47, %v3060_v28  ;;  %v673_v4 = vmul.f32 %v3095_v56, %v3095_v56  ;;  %v3118_v6 = vmul.f32 0.7978846, %v736_v8 }
 0x108   : > { %v684_v7 = vmul.f32 %v660_v51, %v3063_v32  ;;  %v667_v9 = vmul.f32 %v3088_v52, %v3088_v52  ;;  %v675_v10 = vmul.f32 %v3098_v57, %v3098_v57  ;;  %v792_v18 = vmul.f32 0.5, %v3028_v36 }
 0x109   : > { %v753_v11 = vmul.f32 0.7978846, %v729_v53  ;;  %v737_v12 = vadd.f32 %v713_v55, %v3051_v14  ;;  %v697_v21 = vmul.f32 %v673_v4, %v3095_v56  ;;  %v690_v23 = vmul.f32 %v666_v61, %v3082_v48 }
 0x10a   : > { %v692_v29 = vmul.f32 %v668_v50, %v3091_v15  ;;  %v699_v30 = vmul.f32 %v675_v10, %v3098_v57  ;;  %v674_v31 = vmul.f32 %v3109_v0, %v3109_v0  ;;  %2633 = vtanh.f32 %v759_v35 }
 0x10b   : > { %v2624_v22 = vpop.eup %2623  ;;  %v707_v20 = vmul.f32 0.044715, %v683_v2  ;;  %v706_v36 = vmul.f32 0.044715, %v682_v3  ;;  %v721_v25 = vmul.f32 0.044715, %v697_v21  ;;  %v691_v47 = vmul.f32 %v667_v9, %v3088_v52 }
 0x10c   : > { %v2626_v40 = vpop.eup %2625  ;;  %v708_v38 = vmul.f32 0.044715, %v684_v7  ;;  %v723_v49 = vmul.f32 0.044715, %v699_v30  ;;  %v698_v8 = vmul.f32 %v674_v31, %v3109_v0  ;;  %v837_v51 = vadd.f32 1.0, %v2624_v22 }
 0x10d   : > { %v2628_v44 = vpop.eup %2627  ;;  %v761_v53 = vmul.f32 0.7978846, %v737_v12  ;;  %v745_v55 = vadd.f32 %v721_v25, %v3095_v56  ;;  %v3137_v61 = vadd.f32 %v650_v33, %v2957_v41  ;;  %2635 = vtanh.f32 %v753_v11 }
 0x10e   : > { %v2630_v50 = vpop.eup %2629  ;;  %v714_v35 = vmul.f32 0.044715, %v690_v23  ;;  %v716_v2 = vmul.f32 0.044715, %v692_v29  ;;  %v722_v3 = vmul.f32 0.044715, %v698_v8  ;;  %v747_v12 = vadd.f32 %v723_v49, %v3098_v57 }
 0x10f   : > { %v2632_v4 = vpop.eup %2631  ;;  %v839_v10 = vadd.f32 1.0, %v2626_v40  ;;  %v769_v7 = vmul.f32 0.7978846, %v745_v55  ;;  %v676_v9 = vmul.f32 %v3137_v61, %v3137_v61  ;;  %v838_v21 = vadd.f32 1.0, %v2628_v44 }
 0x110   : > { %v715_v30 = vmul.f32 0.044715, %v691_v47  ;;  %v746_v22 = vadd.f32 %v722_v3, %v3109_v0  ;;  %v840_v31 = vadd.f32 1.0, %v2632_v4  ;;  %v861_v41 = vmul.f32 %v837_v51, %v3071_v43 }
 0x111   : > { %2637 = vtanh.f32 %v761_v53  ;;  %v700_v11 = vmul.f32 %v676_v9, %v3137_v61  ;;  %v862_v23 = vmul.f32 %v838_v21, %v790_v1  ;;  %v738_v29 = vadd.f32 %v714_v35, %v3082_v48 }
 0x112   : > { %2639 = vtanh.f32 %v769_v7  ;;  %v770_v33 = vmul.f32 0.7978846, %v746_v22  ;;  %v864_v40 = vmul.f32 %v840_v31, %v792_v18  ;;  %v863_v25 = vmul.f32 %v839_v10, %v3075_v42 }
 0x113   : > { %v740_v44 = vadd.f32 %v716_v2, %v3091_v15  ;;  %v724_v47 = vmul.f32 0.044715, %v700_v11  ;;  %2524 = vmatprep.subr.msk.mxu0 %vm296_vm0, %v862_v23  ;;  %2641 = vtanh.f32 %v3102_v60  ;;  %v739_v43 = vadd.f32 %v715_v30, %v3088_v52 }
 0x114   : > { %v771_v49 = vmul.f32 0.7978846, %v747_v12  ;;  %2643 = vtanh.f32 %v770_v33  ;;  %2529 = vmatprep.subr.msk.mxu1 %vm296_vm0, %v864_v40  ;;  %2525 = vmatpush1.msk.msra.mxu0 %vm296_vm0, %v861_v41  ;;  %v730_v1 = vadd.f32 %v706_v36, %v3060_v28  ;;  %v732_v42 = vadd.f32 %v708_v38, %v3063_v32 }
 0x115   : > { %v748_v18 = vadd.f32 %v724_v47, %v3137_v61  ;;  %2530 = vmatpush1.msk.msra.mxu1 %vm296_vm0, %v863_v25  ;;  %2645 = vtanh.f32 %v3118_v6  ;;  %v762_v8 = vmul.f32 0.7978846, %v738_v29  ;;  %v731_v60 = vadd.f32 %v707_v20, %v3057_v26 }
 0x116   : > { %2647 = vtanh.f32 %v3054_v24  ;;  %v764_v51 = vmul.f32 0.7978846, %v740_v44  ;;  %v763_v35 = vmul.f32 0.7978846, %v739_v43  ;;  %v754_v36 = vmul.f32 0.7978846, %v730_v1 }
 0x117   : > { %v772_v53 = vmul.f32 0.7978846, %v748_v18  ;;  %2649 = vtanh.f32 %v3067_v34  ;;  %v2634_v55 = vpop.eup %2633  ;;  %v756_v2 = vmul.f32 0.7978846, %v732_v42  ;;  %v755_v6 = vmul.f32 0.7978846, %v731_v60 }
 0x118   : > { %2651 = vtanh.f32 %v771_v49  ;;  %v829_v34 = vadd.f32 1.0, %v2630_v50  ;;  %v773_v10 = vmul.f32 0.5, %v2962_v45  ;;  %v782_v7 = vmul.f32 0.5, %v3002_v13 }
 0x119   : > { %2653 = vtanh.f32 %v772_v53  ;;  %v781_v30 = vmul.f32 0.5, %v2978_v58  ;;  %v783_v12 = vmul.f32 0.5, %v2985_v63  ;;  %v831_v22 = vadd.f32 1.0, %v2634_v55 }
 0x11a   : > { %2655 = vtanh.f32 %v762_v8  ;;  %v3161_v3 = vpop.eup %2635  ;;  %v774_v31 = vmul.f32 0.5, %v2974_v54  ;;  %v784_v23 = vmul.f32 0.5, %v3017_v27  ;;  %v821_v29 = vadd.f32 1.0, %v3100_v59  ;;  %v3177_v8 = vpop.permute.xlu1 %881 }
 0x11b   : > { %2657 = vtanh.f32 %v764_v51  ;;  %v853_v33 = vmul.f32 %v829_v34, %v781_v30  ;;  %v823_v40 = vadd.f32 1.0, %v3116_v5  ;;  %v775_v58 = vmul.f32 0.5, %v2965_v46  ;;  %v884_v34 = vpop.permute.xlu0 %883 }
 0x11c   : > { %2659 = vtanh.f32 %v763_v35  ;;  %v776_v54 = vmul.f32 0.5, %v2982_v62  ;;  %v794_v27 = vmul.f32 0.5, %v3109_v0  ;;  %v796_v49 = vmul.f32 0.5, %v3137_v61 }
 0x11d   : > { %2661 = vtanh.f32 %v754_v36  ;;  %v855_v59 = vmul.f32 %v831_v22, %v783_v12  ;;  %v845_v46 = vmul.f32 %v821_v29, %v773_v10  ;;  %v847_v62 = vmul.f32 %v823_v40, %v775_v58 }
 0x11e   : > { %v3163_v24 = vpop.eup %2637  ;;  %2663 = vtanh.f32 %v756_v2  ;;  %v793_v61 = vmul.f32 0.5, %v3095_v56  ;;  %v795_v2 = vmul.f32 0.5, %v3098_v57  ;;  %v786_v57 = vmul.f32 0.5, %v3082_v48 }
 0x11f   : > { %v2640_v20 = vpop.eup %2639  ;;  %2665 = vtanh.f32 %v755_v6  ;;  %v788_v30 = vmul.f32 0.5, %v3091_v15  ;;  %v825_v48 = vadd.f32 1.0, %v3161_v3  ;;  %v778_v15 = vmul.f32 0.5, %v3060_v28 }
 0x120   : > { %v2642_v38 = vpop.eup %2641  ;;  %v841_v42 = vadd.f32 1.0, %v2640_v20  ;;  %v780_v29 = vmul.f32 0.5, %v3063_v32  ;;  %v779_v3 = vmul.f32 0.5, %v3057_v26  ;;  %v2792_v26 = vmov 2  }
 0x121   : > { %v2644_v4 = vpop.eup %2643  ;;  %v830_v9 = vadd.f32 1.0, %v2642_v38  ;;  %2615 = vset.pattern.permute.xlu1 %v2792_v26  ;;  %2616 = vset.pattern.permute.xlu0 %v2792_v26 }
 0x122   : > { %v2646_v21 = vpop.eup %2645  ;;  %v842_v25 = vadd.f32 1.0, %v2644_v4  ;;  %v865_v38 = vmul.f32 %v841_v42, %v793_v61  ;;  %v833_v4 = vadd.f32 1.0, %v3163_v24  ;;  %v787_v24 = vmul.f32 0.5, %v3088_v52  ;;  %1475 = vperm.xlu1 %2615, %v2880_v17   ;;  %1471 = vperm.xlu0 %2616, %v2935_v39  }
 0x123   : > { %v2648_v41 = vpop.eup %2647  ;;  %v854_v11 = vmul.f32 %v830_v9, %v782_v7  ;;  %v832_v50 = vadd.f32 1.0, %v2646_v21  ;;  %v785_v21 = vmul.f32 0.5, %v3051_v14  ;;  %v886_v14 = vpop.permute.xlu1 %885  ;;  %v777_v52 = vmul.f32 0.5, %v3031_v37 }
 0x124   : > { %v2650_v45 = vpop.eup %2649  ;;  %v822_v13 = vadd.f32 1.0, %v2648_v41  ;;  %v866_v55 = vmul.f32 %v842_v25, %v794_v27 }
 0x125   : > { %v2652_v44 = vpop.eup %2651  ;;  %946 = vmatprep.subr.mxu0 %v854_v11  ;;  %v856_v63 = vmul.f32 %v832_v50, %v784_v23  ;;  %v824_v47 = vadd.f32 1.0, %v2650_v45  ;;  %v857_v11 = vmul.f32 %v833_v4, %v785_v21 }
 0x126   : > { %v2654_v43 = vpop.eup %2653  ;;  %947 = vmatpush1.msra.mxu0 %v853_v33  ;;  %v846_v1 = vmul.f32 %v822_v13, %v774_v31  ;;  %v843_v53 = vadd.f32 1.0, %v2652_v44  ;;  %v849_v13 = vmul.f32 %v825_v48, %v777_v52  ;;  %1467 = vperm.xlu1 %2615, %v2885_v19  }
 0x127   : > { %v2656_v18 = vpop.eup %2655  ;;  %1029 = vmatprep.subr.mxu1 %v856_v63  ;;  %v848_v5 = vmul.f32 %v824_v47, %v776_v54  ;;  %v844_v60 = vadd.f32 1.0, %v2654_v43  ;;  %v3226_v28 = vpop.permute.xlu1 %874 }
 0x128   : > { %v2658_v51 = vpop.eup %2657  ;;  %1030 = vmatpush1.msra.mxu1 %v855_v59  ;;  %948 = vmatprep.subr.mxu0 %v846_v1  ;;  %v834_v6 = vadd.f32 1.0, %v2656_v18  ;;  %v867_v7 = vmul.f32 %v843_v53, %v795_v2 }
 0x129   : > { %v2660_v0 = vpop.eup %2659  ;;  %1031 = vmatprep.subr.mxu1 %v848_v5  ;;  %949 = vmatpush1.msra.mxu0 %v845_v46  ;;  %v868_v35 = vmul.f32 %v844_v60, %v796_v49  ;;  %v836_v56 = vadd.f32 1.0, %v2658_v51 }
 0x12a   : > { %v2662_v36 = vpop.eup %2661  ;;  %1032 = vmatpush1.msra.mxu1 %v847_v62  ;;  %2526 = vmatmul.mubr.msk.f32.vlgmr.msra.gmra.mxu0 %vm887_vm2, %v3177_v8  ;;  %v835_v9 = vadd.f32 1.0, %v2660_v0  ;;  %v858_v22 = vmul.f32 %v834_v6, %v786_v57 }
 0x12b   : > { %v2664_v20 = vpop.eup %2663  ;;  %2531 = vmatmul.mubr.msk.f32.vlgmr.msra.gmra.mxu1 %vm887_vm2, %v3177_v8  ;;  %988 = vmatprep.mubr.f32.mxu0 %v2787_v16  ;;  %v826_v12 = vadd.f32 1.0, %v2662_v36  ;;  %v860_v41 = vmul.f32 %v836_v56, %v788_v30  ;;  %v3228_v32 = vpop.permute.xlu1 %870 }
 0x12c   : > { %v2666_v10 = vpop.eup %2665  ;;  %1071 = vmatprep.mubr.f32.mxu1 %v2787_v16  ;;  %2534 = vmatprep.subr.msk.mxu0 %vm296_vm0, %v866_v55  ;;  %v828_v31 = vadd.f32 1.0, %v2664_v20  ;;  %v859_v50 = vmul.f32 %v835_v9, %v787_v24  ;;  %v3260_v55 = vpop.permute.xlu0 %878 }
 0x12d   : > { %2539 = vmatprep.subr.msk.mxu1 %vm296_vm0, %v868_v35  ;;  %2535 = vmatpush1.msk.msra.mxu0 %vm296_vm0, %v865_v38  ;;  %v827_v23 = vadd.f32 1.0, %v2666_v10  ;;  %v850_v45 = vmul.f32 %v826_v12, %v778_v15 }
 0x12e   : > { %2527 = vmatmul.mubr.msk.f32.gmra.mxu0 %vm887_vm2, %v884_v34  ;;  %2540 = vmatpush1.msk.msra.mxu1 %vm296_vm0, %v867_v7  ;;  %v852_v33 = vmul.f32 %v828_v31, %v780_v29 }
 0x12f   : > { %2532 = vmatmul.mubr.msk.f32.gmra.mxu1 %vm887_vm2, %v884_v34  ;;  %994 = vmatprep.mubr.f32.mxu0 %v2787_v16  ;;  %v851_v37 = vmul.f32 %v827_v23, %v779_v3 }
 0x130   : > { %1077 = vmatprep.mubr.f32.mxu1 %v2787_v16  ;;  %1112 = vmatprep.subr.mxu0 %v858_v22 }
 0x131   : > { %1195 = vmatprep.subr.mxu1 %v860_v41  ;;  %1113 = vmatpush1.msra.mxu0 %v857_v11 }
 0x132   : > { %2528 = vmatmul.mubr.msk.f32.gmra.mxu0 %vm887_vm2, %v886_v14  ;;  %1196 = vmatpush1.msra.mxu1 %v859_v50 }
 0x133   : > { %2533 = vmatmul.mubr.msk.f32.gmra.mxu1 %vm887_vm2, %v886_v14  ;;  %1114 = vmatprep.subr.mxu0 %v850_v45 }
 0x134   : > { %1197 = vmatprep.subr.mxu1 %v852_v33  ;;  %1115 = vmatpush1.msra.mxu0 %v849_v13 }
 0x135   : > { %1148 = vmatprep.mubr.f32.mxu0 %v2787_v16  ;;  %1198 = vmatpush1.msra.mxu1 %v851_v37 }
 0x136   : > { %1231 = vmatprep.mubr.f32.mxu1 %v2787_v16  ;;  %2536 = vmatmul.mubr.msk.f32.vlgmr.msra.gmra.mxu0 %vm887_vm2, %v3177_v8 }
 0x137   : > { %2541 = vmatmul.mubr.msk.f32.vlgmr.msra.gmra.mxu1 %vm887_vm2, %v3177_v8  ;;  %1154 = vmatprep.mubr.f32.mxu0 %v2787_v16 }
 0x138   : > { %1237 = vmatprep.mubr.f32.mxu1 %v2787_v16 }
 0x13a   : > { %2537 = vmatmul.mubr.msk.f32.gmra.mxu0 %vm887_vm2, %v884_v34 }
 0x13b   : > { %2542 = vmatmul.mubr.msk.f32.gmra.mxu1 %vm887_vm2, %v884_v34  ;;  %1160 = vmatprep.mubr.f32.mxu0 %v2787_v16 }
 0x13c   : > { %1243 = vmatprep.mubr.f32.mxu1 %v2787_v16 }
 0x13e   : > { %2538 = vmatmul.mubr.msk.f32.gmra.mxu0 %vm887_vm2, %v886_v14 }
 0x13f   : > { %2543 = vmatmul.mubr.msk.f32.gmra.mxu1 %vm887_vm2, %v886_v14  ;;  %1578 = vmatprep.mubr.f32.mxu0 %v2787_v16 }
 0x140   : > { %1661 = vmatprep.mubr.f32.mxu1 %v2787_v16 }
 0x1ea   : > { %v984_v40 = vpop.f32.mrf.mxu0 }
 0x1eb   : > { %v3231_v25 = vadd.f32 %v984_v40, %v3228_v32  ;;  %v1067_v44 = vpop.f32.mrf.mxu1 }
 0x1ec   : > { %v3234_v58 = vadd.f32 %v1067_v44, %v3228_v32  ;;  %v986_v63 = vpop.f32.mrf.mxu0 }
 0x1ed   : > { %v1069_v54 = vpop.f32.mrf.mxu1  ;;  %v1250_v17 = vmul.f32 %v3231_v25, %v3231_v25  ;;  %v3241_v43 = vadd.f32 %v986_v63, %v3228_v32 }
 0x1ee   : > { %v990_v47 = vpop.f32.mrf.mxu0  ;;  %v1252_v19 = vmul.f32 %v3234_v58, %v3234_v58  ;;  %v3244_v49 = vadd.f32 %v1069_v54, %v3228_v32 }
 0x1ef   : > { %v1073_v39 = vpop.f32.mrf.mxu1  ;;  %v3247_v59 = vadd.f32 %v990_v47, %v3226_v28  ;;  %v1274_v42 = vmul.f32 %v1250_v17, %v3231_v25  ;;  %v1251_v46 = vmul.f32 %v3241_v43, %v3241_v43 }
 0x1f0   : > { %v992_v27 = vpop.f32.mrf.mxu0  ;;  %v1276_v8 = vmul.f32 %v1252_v19, %v3234_v58  ;;  %v3254_v60 = vadd.f32 %v1073_v39, %v3226_v28  ;;  %v1253_v53 = vmul.f32 %v3244_v49, %v3244_v49 }
 0x1f1   : > { %v1075_v1 = vpop.f32.mrf.mxu1  ;;  %v1258_v62 = vmul.f32 %v3247_v59, %v3247_v59  ;;  %v1298_v61 = vmul.f32 0.044715, %v1274_v42  ;;  %v1275_v2 = vmul.f32 %v1251_v46, %v3241_v43  ;;  %v3274_v4 = vadd.f32 %v992_v27, %v3226_v28 }
 0x1f2   : > { %v996_v18 = vpop.f32.mrf.mxu0  ;;  %v1300_v36 = vmul.f32 0.044715, %v1276_v8  ;;  %v1260_v6 = vmul.f32 %v3254_v60, %v3254_v60  ;;  %v1277_v20 = vmul.f32 %v1253_v53, %v3244_v49  ;;  %v3277_v10 = vadd.f32 %v1075_v1, %v3226_v28 }
 0x1f3   : > { %v1079_v5 = vpop.f32.mrf.mxu1  ;;  %v1282_v38 = vmul.f32 %v1258_v62, %v3247_v59  ;;  %v3268_v34 = vadd.f32 %v996_v18, %v3260_v55  ;;  %v1322_v21 = vadd.f32 %v1298_v61, %v3231_v25  ;;  %v1299_v22 = vmul.f32 0.044715, %v1275_v2 }
 0x1f4   : > { %v998_v51 = vpop.f32.mrf.mxu0  ;;  %v3271_v56 = vadd.f32 %v1079_v5, %v3260_v55  ;;  %v1324_v24 = vadd.f32 %v1300_v36, %v3234_v58  ;;  %v1284_v31 = vmul.f32 %v1260_v6, %v3254_v60  ;;  %v1301_v14 = vmul.f32 0.044715, %v1277_v20 }
 0x1f5   : > { %v1081_v0 = vpop.f32.mrf.mxu1  ;;  %v3280_v7 = vadd.f32 %v998_v51, %v3260_v55  ;;  %v1266_v30 = vmul.f32 %v3268_v34, %v3268_v34  ;;  %v1306_v41 = vmul.f32 0.044715, %v1282_v38  ;;  %v1259_v23 = vmul.f32 %v3274_v4, %v3274_v4 }
 0x1f6   : > { %v1150_v35 = vpop.f32.mrf.mxu0  ;;  %v3283_v57 = vadd.f32 %v1081_v0, %v3260_v55  ;;  %v1268_v48 = vmul.f32 %v3271_v56, %v3271_v56  ;;  %v1261_v52 = vmul.f32 %v3277_v10, %v3277_v10  ;;  %v1346_v45 = vmul.f32 0.7978846, %v1322_v21 }
 0x1f7   : > { %v1233_v9 = vpop.f32.mrf.mxu1  ;;  %v1290_v11 = vmul.f32 %v1266_v30, %v3268_v34  ;;  %v1267_v15 = vmul.f32 %v3280_v7, %v3280_v7  ;;  %v3304_v37 = vadd.f32 %v1150_v35, %v3228_v32  ;;  %v1323_v40 = vadd.f32 %v1299_v22, %v3241_v43 }
 0x1f8   : > { %v1152_v12 = vpop.f32.mrf.mxu0  ;;  %v1292_v50 = vmul.f32 %v1268_v48, %v3271_v56  ;;  %v1269_v29 = vmul.f32 %v3283_v57, %v3283_v57  ;;  %v1308_v44 = vmul.f32 0.044715, %v1284_v31  ;;  %v1330_v47 = vadd.f32 %v1306_v41, %v3247_v59 }
 0x1f9   : > { %v1235_v3 = vpop.f32.mrf.mxu1  ;;  %v1314_v33 = vmul.f32 0.044715, %v1290_v11  ;;  %v1291_v13 = vmul.f32 %v1267_v15, %v3280_v7  ;;  %v1254_v19 = vmul.f32 %v3304_v37, %v3304_v37  ;;  %v1283_v27 = vmul.f32 %v1259_v23, %v3274_v4 }
 0x1fa   : > { %v1156_v26 = vpop.f32.mrf.mxu0  ;;  %v1316_v63 = vmul.f32 0.044715, %v1292_v50  ;;  %v1293_v54 = vmul.f32 %v1269_v29, %v3283_v57  ;;  %v1285_v1 = vmul.f32 %v1261_v52, %v3277_v10  ;;  %v1348_v8 = vmul.f32 0.7978846, %v1324_v24 }
 0x1fb   : > { %v1338_v17 = vadd.f32 %v1314_v33, %v3268_v34  ;;  %v1315_v39 = vmul.f32 0.044715, %v1291_v13  ;;  %v1239_v5 = vpop.f32.mrf.mxu1  ;;  %v1325_v46 = vadd.f32 %v1301_v14, %v3244_v49  ;;  %2667 = vtanh.f32 %v1346_v45 }
 0x1fc   : > { %v1340_v18 = vadd.f32 %v1316_v63, %v3271_v56  ;;  %v1317_v42 = vmul.f32 0.044715, %v1293_v54  ;;  %v1158_v62 = vpop.f32.mrf.mxu0  ;;  %v1278_v35 = vmul.f32 %v1254_v19, %v3304_v37  ;;  %v1354_v36 = vmul.f32 0.7978846, %v1330_v47 }
 0x1fd   : > { %v1362_v51 = vmul.f32 0.7978846, %v1338_v17  ;;  %v1339_v53 = vadd.f32 %v1315_v39, %v3280_v7  ;;  %v1332_v2 = vadd.f32 %v1308_v44, %v3254_v60  ;;  %v1307_v20 = vmul.f32 0.044715, %v1283_v27  ;;  %v1241_v30 = vpop.f32.mrf.mxu1 }
 0x1fe   : > { %v1364_v0 = vmul.f32 0.7978846, %v1340_v18  ;;  %v1341_v61 = vadd.f32 %v1317_v42, %v3283_v57  ;;  %v1309_v38 = vmul.f32 0.044715, %v1285_v1  ;;  %v3320_v24 = vmul.f32 0.7978846, %v1323_v40  ;;  %v1162_v48 = vpop.f32.mrf.mxu0 }
 0x1ff   : > { %2669 = vtanh.f32 %v1362_v51  ;;  %v1363_v6 = vmul.f32 0.7978846, %v1339_v53  ;;  %v3323_v22 = vadd.f32 %v1233_v9, %v3228_v32  ;;  %v3326_v31 = vadd.f32 %v1152_v12, %v3228_v32 }
 0x200   : > { %2671 = vtanh.f32 %v1364_v0  ;;  %v1365_v21 = vmul.f32 0.7978846, %v1341_v61  ;;  %v1302_v14 = vmul.f32 0.044715, %v1278_v35  ;;  %v3329_v41 = vadd.f32 %v1235_v3, %v3228_v32  ;;  %v1245_v32 = vpop.f32.mrf.mxu1  ;;  %v1164_v13 = vpop.f32.mrf.mxu0 }
 0x201   : > { %2673 = vtanh.f32 %v1363_v6  ;;  %v3332_v11 = vadd.f32 %v1156_v26, %v3226_v28  ;;  %v3334_v15 = vmul.f32 0.7978846, %v1325_v46  ;;  %v1356_v23 = vmul.f32 0.7978846, %v1332_v2 }
 0x202   : > { %2675 = vtanh.f32 %v1365_v21  ;;  %v3337_v52 = vadd.f32 %v1239_v5, %v3226_v28  ;;  %v1331_v9 = vadd.f32 %v1307_v20, %v3274_v4  ;;  %v1333_v12 = vadd.f32 %v1309_v38, %v3277_v10  ;;  %v1247_v5 = vpop.f32.mrf.mxu1 }
 0x203   : > { %2677 = vtanh.f32 %v1348_v8  ;;  %v3342_v50 = vmul.f32 0.5, %v3268_v34  ;;  %v3345_v29 = vmul.f32 0.5, %v3271_v56  ;;  %v1256_v3 = vmul.f32 %v3323_v22, %v3323_v22 }
 0x204   : > { %2679 = vtanh.f32 %v1354_v36  ;;  %v1255_v45 = vmul.f32 %v3326_v31, %v3326_v31  ;;  %v3352_v33 = vadd.f32 %v1158_v62, %v3226_v28  ;;  %v1326_v26 = vadd.f32 %v1302_v14, %v3304_v37 }
 0x205   : > { %v1257_v34 = vmul.f32 %v3329_v41, %v3329_v41  ;;  %v1262_v40 = vmul.f32 %v3332_v11, %v3332_v11  ;;  %v3360_v56 = vadd.f32 %v1241_v30, %v3226_v28  ;;  %v1264_v44 = vmul.f32 %v3337_v52, %v3337_v52 }
 0x206   : > { %v1263_v63 = vmul.f32 %v3352_v33, %v3352_v33  ;;  %v3367_v54 = vadd.f32 %v1162_v48, %v3260_v55  ;;  %v3370_v47 = vadd.f32 %v1245_v32, %v3260_v55  ;;  %v3372_v17 = vmul.f32 0.7978846, %v1331_v9 }
 0x207   : > { %v1387_v39 = vmul.f32 0.5, %v3280_v7  ;;  %v1265_v28 = vmul.f32 %v3360_v56, %v3360_v56  ;;  %v3378_v19 = vadd.f32 %v1164_v13, %v3260_v55  ;;  %v3380_v27 = vmul.f32 0.7978846, %v1333_v12 }
 0x208   : > { %v1280_v1 = vmul.f32 %v1256_v3, %v3323_v22  ;;  %v1279_v18 = vmul.f32 %v1255_v45, %v3326_v31  ;;  %v1270_v42 = vmul.f32 %v3367_v54, %v3367_v54  ;;  %v1350_v8 = vmul.f32 0.7978846, %v1326_v26  ;;  %v3390_v53 = vpop.eup %2667 }
 0x209   : > { %v1281_v46 = vmul.f32 %v1257_v34, %v3329_v41  ;;  %v1286_v7 = vmul.f32 %v1262_v40, %v3332_v11  ;;  %v1272_v51 = vmul.f32 %v3370_v47, %v3370_v47  ;;  %v1288_v62 = vmul.f32 %v1264_v44, %v3337_v52 }
 0x20a   : > { %v1287_v0 = vmul.f32 %v1263_v63, %v3352_v33  ;;  %v1294_v61 = vmul.f32 %v1270_v42, %v3367_v54  ;;  %v1271_v35 = vmul.f32 %v3378_v19, %v3378_v19  ;;  %v1389_v2 = vmul.f32 0.5, %v3283_v57 }
 0x20b   : > { %v1289_v6 = vmul.f32 %v1265_v28, %v3360_v56  ;;  %v1296_v20 = vmul.f32 %v1272_v51, %v3370_v47  ;;  %v3401_v38 = vadd.f32 %v1247_v5, %v3260_v55  ;;  %2681 = vtanh.f32 %v1356_v23 }
 0x20c   : > { %v2670_v36 = vpop.eup %2669  ;;  %v1304_v30 = vmul.f32 0.044715, %v1280_v1  ;;  %v1303_v48 = vmul.f32 0.044715, %v1279_v18  ;;  %v1318_v14 = vmul.f32 0.044715, %v1294_v61  ;;  %2683 = vtanh.f32 %v1350_v8 }
 0x20d   : > { %v2672_v21 = vpop.eup %2671  ;;  %v1305_v12 = vmul.f32 0.044715, %v1281_v46  ;;  %v1310_v32 = vmul.f32 0.044715, %v1286_v7  ;;  %v1320_v3 = vmul.f32 0.044715, %v1296_v20  ;;  %v1295_v34 = vmul.f32 %v1271_v35, %v3378_v19 }
 0x20e   : > { %v2674_v9 = vpop.eup %2673  ;;  %v1312_v13 = vmul.f32 0.044715, %v1288_v62  ;;  %v1311_v57 = vmul.f32 0.044715, %v1287_v0  ;;  %v1342_v26 = vadd.f32 %v1318_v14, %v3367_v54  ;;  %v1434_v55 = vadd.f32 1.0, %v2670_v36 }
 0x20f   : > { %v2676_v45 = vpop.eup %2675  ;;  %v1313_v44 = vmul.f32 0.044715, %v1289_v6  ;;  %v1344_v23 = vadd.f32 %v1320_v3, %v3370_v47  ;;  %v1273_v63 = vmul.f32 %v3401_v38, %v3401_v38  ;;  %v1436_v1 = vadd.f32 1.0, %v2672_v21 }
 0x210   : > { %v3405_v40 = vpop.eup %2677  ;;  %v1366_v18 = vmul.f32 0.7978846, %v1342_v26  ;;  %v1319_v42 = vmul.f32 0.044715, %v1295_v34  ;;  %v1435_v5 = vadd.f32 1.0, %v2674_v9  ;;  %v1334_v8 = vadd.f32 %v1310_v32, %v3332_v11 }
 0x211   : > { %v2680_v28 = vpop.eup %2679  ;;  %v1368_v46 = vmul.f32 0.7978846, %v1344_v23  ;;  %v1297_v7 = vmul.f32 %v1273_v63, %v3401_v38  ;;  %v1437_v51 = vadd.f32 1.0, %v2676_v45  ;;  %v1335_v62 = vadd.f32 %v1311_v57, %v3352_v33 }
 0x212   : > { %2685 = vtanh.f32 %v1366_v18  ;;  %v1343_v0 = vadd.f32 %v1319_v42, %v3378_v19  ;;  %v1459_v61 = vmul.f32 %v1435_v5, %v1387_v39  ;;  %v1458_v35 = vmul.f32 %v1434_v55, %v3342_v50 }
 0x213   : > { %2687 = vtanh.f32 %v1368_v46  ;;  %v1321_v36 = vmul.f32 0.044715, %v1297_v7  ;;  %v1461_v6 = vmul.f32 %v1437_v51, %v1389_v2  ;;  %v1460_v20 = vmul.f32 %v1436_v1, %v3345_v29 }
 0x214   : > { %v1337_v21 = vadd.f32 %v1313_v44, %v3360_v56  ;;  %v1367_v14 = vmul.f32 0.7978846, %v1343_v0  ;;  %2544 = vmatprep.subr.msk.mxu0 %vm296_vm0, %v1459_v61  ;;  %2689 = vtanh.f32 %v3372_v17  ;;  %v1336_v9 = vadd.f32 %v1312_v13, %v3337_v52 }
 0x215   : > { %v1345_v32 = vadd.f32 %v1321_v36, %v3401_v38  ;;  %2549 = vmatprep.subr.msk.mxu1 %vm296_vm0, %v1461_v6  ;;  %2545 = vmatpush1.msk.msra.mxu0 %vm296_vm0, %v1458_v35  ;;  %2691 = vtanh.f32 %v3380_v27  ;;  %v1327_v50 = vadd.f32 %v1303_v48, %v3326_v31  ;;  %v1358_v29 = vmul.f32 0.7978846, %v1334_v8 }
 0x216   : > { %2693 = vtanh.f32 %v1367_v14  ;;  %2550 = vmatpush1.msk.msra.mxu1 %vm296_vm0, %v1460_v20  ;;  %v1329_v39 = vadd.f32 %v1305_v12, %v3329_v41  ;;  %v1359_v2 = vmul.f32 0.7978846, %v1335_v62  ;;  %v1328_v3 = vadd.f32 %v1304_v30, %v3323_v22 }
 0x217   : > { %v1369_v17 = vmul.f32 0.7978846, %v1345_v32  ;;  %2695 = vtanh.f32 %v3320_v24  ;;  %v1361_v45 = vmul.f32 0.7978846, %v1337_v21  ;;  %v1360_v57 = vmul.f32 0.7978846, %v1336_v9 }
 0x218   : > { %2697 = vtanh.f32 %v3334_v15  ;;  %v2682_v13 = vpop.eup %2681  ;;  %v1351_v48 = vmul.f32 0.7978846, %v1327_v50  ;;  %v1353_v26 = vmul.f32 0.7978846, %v1329_v39  ;;  %v1352_v34 = vmul.f32 0.7978846, %v1328_v3 }
 0x219   : > { %2699 = vtanh.f32 %v1369_v17  ;;  %v3430_v27 = vpop.eup %2683  ;;  %v1426_v30 = vadd.f32 1.0, %v2680_v28  ;;  %v1378_v44 = vmul.f32 0.5, %v3247_v59  ;;  %v1379_v23 = vmul.f32 0.5, %v3274_v4 }
 0x21a   : > { %2701 = vtanh.f32 %v1358_v29  ;;  %v1428_v1 = vadd.f32 1.0, %v2682_v13  ;;  %v1381_v42 = vmul.f32 0.5, %v3277_v10  ;;  %v1371_v8 = vmul.f32 0.5, %v3241_v43  ;;  %v3444_v29 = vpop.permute.xlu0 %1478 }
 0x21b   : > { %2703 = vtanh.f32 %v1359_v2  ;;  %v1380_v7 = vmul.f32 0.5, %v3254_v60  ;;  %v1450_v62 = vmul.f32 %v1426_v30, %v1378_v44  ;;  %v1418_v28 = vadd.f32 1.0, %v3390_v53 }
 0x21c   : > { %2705 = vtanh.f32 %v1361_v45  ;;  %v1420_v4 = vadd.f32 1.0, %v3405_v40  ;;  %v1370_v6 = vmul.f32 0.5, %v3231_v25  ;;  %v1373_v43 = vmul.f32 0.5, %v3244_v49 }
 0x21d   : > { %2707 = vtanh.f32 %v1360_v57  ;;  %v1452_v10 = vmul.f32 %v1428_v1, %v1380_v7  ;;  %v1372_v60 = vmul.f32 0.5, %v3234_v58  ;;  %v1391_v14 = vmul.f32 0.5, %v3378_v19 }
 0x21e   : > { %2709 = vtanh.f32 %v1351_v48  ;;  %v1393_v50 = vmul.f32 0.5, %v3401_v38  ;;  %v1442_v39 = vmul.f32 %v1418_v28, %v1370_v6  ;;  %v1390_v19 = vmul.f32 0.5, %v3367_v54 }
 0x21f   : > { %v2686_v12 = vpop.eup %2685  ;;  %2711 = vtanh.f32 %v1353_v26  ;;  %v1444_v17 = vmul.f32 %v1420_v4, %v1372_v60  ;;  %v1392_v57 = vmul.f32 0.5, %v3370_v47  ;;  %v1383_v47 = vmul.f32 0.5, %v3352_v33 }
 0x220   : > { %v2688_v24 = vpop.eup %2687  ;;  %2713 = vtanh.f32 %v1352_v34  ;;  %v1438_v40 = vadd.f32 1.0, %v2686_v12  ;;  %v1481_v34 = vpop.permute.xlu1 %1480  ;;  %v1385_v44 = vmul.f32 0.5, %v3360_v56  ;;  %v1422_v33 = vadd.f32 1.0, %v3430_v27 }
 0x221   : > { %v2690_v55 = vpop.eup %2689  ;;  %v1440_v2 = vadd.f32 1.0, %v2688_v24  ;;  %v1375_v56 = vmul.f32 0.5, %v3326_v31  ;;  %v1377_v7 = vmul.f32 0.5, %v3329_v41  ;;  %v1376_v27 = vmul.f32 0.5, %v3323_v22  ;;  %v254_v22 = vld [vmem:[%s3763_s2] sm:$0x1] }
 0x222   : > { %v2692_v15 = vpop.eup %2691  ;;  %v1427_v63 = vadd.f32 1.0, %v2690_v55  ;;  %v1462_v26 = vmul.f32 %v1438_v40, %v1390_v19  ;;  %v2793_v31 = vmov 3  }
 0x223   : > { %v2694_v18 = vpop.eup %2693  ;;  %v1429_v5 = vadd.f32 1.0, %v2692_v15  ;;  %v1464_v30 = vmul.f32 %v1440_v2, %v1392_v57  ;;  %v1382_v15 = vmul.f32 0.5, %v3332_v11  ;;  %v1483_v11 = vpop.permute.xlu0 %1482  ;;  %2617 = vset.pattern.permute.xlu1 %v2793_v31  ;;  %2618 = vset.pattern.permute.xlu0 %v2793_v31 }
 0x224   : > { %v2696_v46 = vpop.eup %2695  ;;  %v1451_v51 = vmul.f32 %v1427_v63, %v1379_v23  ;;  %v1439_v35 = vadd.f32 1.0, %v2694_v18  ;;  %v1384_v63 = vmul.f32 0.5, %v3337_v52  ;;  %v1374_v52 = vmul.f32 0.5, %v3304_v37  ;;  %2065 = vperm.xlu1 %2617, %v254_v22   ;;  %v3492_v41 = vpop.permute.xlu1 %1475 }
 0x225   : > { %v2698_v0 = vpop.eup %2697  ;;  %v1453_v61 = vmul.f32 %v1429_v5, %v1381_v42  ;;  %v1419_v59 = vadd.f32 1.0, %v2696_v46 }
 0x226   : > { %v2700_v36 = vpop.eup %2699  ;;  %1542 = vmatprep.subr.mxu0 %v1451_v51  ;;  %v1421_v20 = vadd.f32 1.0, %v2698_v0  ;;  %v1463_v58 = vmul.f32 %v1439_v35, %v1391_v14  ;;  %v1446_v28 = vmul.f32 %v1422_v33, %v1374_v52 }
 0x227   : > { %v2702_v21 = vpop.eup %2701  ;;  %1625 = vmatprep.subr.mxu1 %v1453_v61  ;;  %1543 = vmatpush1.msra.mxu0 %v1450_v62  ;;  %v1443_v53 = vmul.f32 %v1419_v59, %v1371_v8  ;;  %v1441_v9 = vadd.f32 1.0, %v2700_v36  ;;  %v3502_v6 = vpop.permute.xlu0 %1471 }
 0x228   : > { %v2704_v32 = vpop.eup %2703  ;;  %1626 = vmatpush1.msra.mxu1 %v1452_v10  ;;  %v1445_v25 = vmul.f32 %v1421_v20, %v1373_v43  ;;  %v1430_v12 = vadd.f32 1.0, %v2702_v21  ;;  %v3494_v0 = vpop.permute.xlu1 %1467 }
 0x229   : > { %v2706_v49 = vpop.eup %2705  ;;  %1544 = vmatprep.subr.mxu0 %v1443_v53  ;;  %v1465_v45 = vmul.f32 %v1441_v9, %v1393_v50  ;;  %v1431_v38 = vadd.f32 1.0, %v2704_v32 }
 0x22a   : > { %v2708_v3 = vpop.eup %2707  ;;  %1627 = vmatprep.subr.mxu1 %v1445_v25  ;;  %1545 = vmatpush1.msra.mxu0 %v1442_v39  ;;  %v1433_v54 = vadd.f32 1.0, %v2706_v49  ;;  %v1454_v5 = vmul.f32 %v1430_v12, %v1382_v15 }
 0x22b   : > { %v2710_v13 = vpop.eup %2709  ;;  %1628 = vmatpush1.msra.mxu1 %v1444_v17  ;;  %2546 = vmatmul.mubr.msk.f32.vlgmr.msra.gmra.mxu0 %vm887_vm2, %v3444_v29  ;;  %v1432_v55 = vadd.f32 1.0, %v2708_v3  ;;  %v1455_v1 = vmul.f32 %v1431_v38, %v1383_v47 }
 0x22c   : > { %v2712_v48 = vpop.eup %2711  ;;  %2551 = vmatmul.mubr.msk.f32.vlgmr.msra.gmra.mxu1 %vm887_vm2, %v3444_v29  ;;  %1584 = vmatprep.mubr.f32.mxu0 %v2787_v16  ;;  %v1423_v23 = vadd.f32 1.0, %v2710_v13  ;;  %v1457_v42 = vmul.f32 %v1433_v54, %v1385_v44 }
 0x22d   : > { %v2714_v24 = vpop.eup %2713  ;;  %1667 = vmatprep.mubr.f32.mxu1 %v2787_v16  ;;  %2554 = vmatprep.subr.msk.mxu0 %vm296_vm0, %v1463_v58  ;;  %v1425_v18 = vadd.f32 1.0, %v2712_v48  ;;  %v1456_v46 = vmul.f32 %v1432_v55, %v1384_v63 }
 0x22e   : > { %2559 = vmatprep.subr.msk.mxu1 %vm296_vm0, %v1465_v45  ;;  %2555 = vmatpush1.msk.msra.mxu0 %vm296_vm0, %v1462_v26  ;;  %v1424_v8 = vadd.f32 1.0, %v2714_v24  ;;  %v1447_v51 = vmul.f32 %v1423_v23, %v1375_v56 }
 0x22f   : > { %2547 = vmatmul.mubr.msk.f32.gmra.mxu0 %vm887_vm2, %v1481_v34  ;;  %2560 = vmatpush1.msk.msra.mxu1 %vm296_vm0, %v1464_v30  ;;  %v1449_v62 = vmul.f32 %v1425_v18, %v1377_v7 }
 0x230   : > { %2552 = vmatmul.mubr.msk.f32.gmra.mxu1 %vm887_vm2, %v1481_v34  ;;  %1590 = vmatprep.mubr.f32.mxu0 %v2787_v16  ;;  %v1448_v37 = vmul.f32 %v1424_v8, %v1376_v27 }
 0x231   : > { %1673 = vmatprep.mubr.f32.mxu1 %v2787_v16  ;;  %1708 = vmatprep.subr.mxu0 %v1455_v1 }
 0x232   : > { %1791 = vmatprep.subr.mxu1 %v1457_v42  ;;  %1709 = vmatpush1.msra.mxu0 %v1454_v5 }
 0x233   : > { %2548 = vmatmul.mubr.msk.f32.gmra.mxu0 %vm887_vm2, %v1483_v11  ;;  %1792 = vmatpush1.msra.mxu1 %v1456_v46 }
 0x234   : > { %2553 = vmatmul.mubr.msk.f32.gmra.mxu1 %vm887_vm2, %v1483_v11  ;;  %1710 = vmatprep.subr.mxu0 %v1447_v51 }
 0x235   : > { %1793 = vmatprep.subr.mxu1 %v1449_v62  ;;  %1711 = vmatpush1.msra.mxu0 %v1446_v28 }
 0x236   : > { %1744 = vmatprep.mubr.f32.mxu0 %v2787_v16  ;;  %1794 = vmatpush1.msra.mxu1 %v1448_v37 }
 0x237   : > { %1827 = vmatprep.mubr.f32.mxu1 %v2787_v16  ;;  %2556 = vmatmul.mubr.msk.f32.vlgmr.msra.gmra.mxu0 %vm887_vm2, %v3444_v29 }
 0x238   : > { %2561 = vmatmul.mubr.msk.f32.vlgmr.msra.gmra.mxu1 %vm887_vm2, %v3444_v29  ;;  %1750 = vmatprep.mubr.f32.mxu0 %v2787_v16 }
 0x239   : > { %1833 = vmatprep.mubr.f32.mxu1 %v2787_v16 }
 0x23b   : > { %2557 = vmatmul.mubr.msk.f32.gmra.mxu0 %vm887_vm2, %v1481_v34 }
 0x23c   : > { %2562 = vmatmul.mubr.msk.f32.gmra.mxu1 %vm887_vm2, %v1481_v34  ;;  %1756 = vmatprep.mubr.f32.mxu0 %v2787_v16 }
 0x23d   : > { %1839 = vmatprep.mubr.f32.mxu1 %v2787_v16 }
 0x23f   : > { %2558 = vmatmul.mubr.msk.f32.gmra.mxu0 %vm887_vm2, %v1483_v11 }
 0x240   : > { %2563 = vmatmul.mubr.msk.f32.gmra.mxu1 %vm887_vm2, %v1483_v11  ;;  %2159 = vmatprep.mubr.f32.mxu0 %v2787_v16 }
 0x241   : > { %2230 = vmatprep.mubr.f32.mxu1 %v2787_v16 }
 0x2eb   : > { %v1580_v61 = vpop.f32.mrf.mxu0 }
 0x2ec   : > { %v3497_v59 = vadd.f32 %v1580_v61, %v3494_v0  ;;  %v1663_v4 = vpop.f32.mrf.mxu1 }
 0x2ed   : > { %v3500_v35 = vadd.f32 %v1663_v4, %v3494_v0  ;;  %v1582_v36 = vpop.f32.mrf.mxu0 }
 0x2ee   : > { %v1846_v10 = vmul.f32 %v3497_v59, %v3497_v59  ;;  %v3507_v43 = vadd.f32 %v1582_v36, %v3494_v0  ;;  %v1665_v20 = vpop.f32.mrf.mxu1 }
 0x2ef   : > { %v1848_v21 = vmul.f32 %v3500_v35, %v3500_v35  ;;  %v3512_v60 = vadd.f32 %v1665_v20, %v3494_v0  ;;  %v1586_v14 = vpop.f32.mrf.mxu0 }
 0x2f0   : > { %v1870_v53 = vmul.f32 %v1846_v10, %v3497_v59  ;;  %v1847_v9 = vmul.f32 %v3507_v43, %v3507_v43  ;;  %v3518_v32 = vadd.f32 %v1586_v14, %v3502_v6  ;;  %v1669_v40 = vpop.f32.mrf.mxu1 }
 0x2f1   : > { %v1872_v50 = vmul.f32 %v1848_v21, %v3500_v35  ;;  %v1849_v25 = vmul.f32 %v3512_v60, %v3512_v60  ;;  %v3524_v29 = vadd.f32 %v1669_v40, %v3502_v6  ;;  %v1588_v39 = vpop.f32.mrf.mxu0 }
 0x2f2   : > { %v1894_v49 = vmul.f32 0.044715, %v1870_v53  ;;  %v1854_v2 = vmul.f32 %v3518_v32, %v3518_v32  ;;  %v1671_v17 = vpop.f32.mrf.mxu1  ;;  %v1871_v58 = vmul.f32 %v1847_v9, %v3507_v43  ;;  %v3535_v54 = vadd.f32 %v1588_v39, %v3502_v6 }
 0x2f3   : > { %v1592_v3 = vpop.f32.mrf.mxu0  ;;  %v1896_v19 = vmul.f32 0.044715, %v1872_v50  ;;  %v1873_v13 = vmul.f32 %v1849_v25, %v3512_v60  ;;  %v1856_v38 = vmul.f32 %v3524_v29, %v3524_v29  ;;  %v3540_v23 = vadd.f32 %v1671_v17, %v3502_v6 }
 0x2f4   : > { %v1675_v45 = vpop.f32.mrf.mxu1  ;;  %v1878_v57 = vmul.f32 %v1854_v2, %v3518_v32  ;;  %v1918_v26 = vadd.f32 %v1894_v49, %v3497_v59  ;;  %v1895_v34 = vmul.f32 0.044715, %v1871_v58  ;;  %v3543_v63 = vadd.f32 %v1592_v3, %v3492_v41 }
 0x2f5   : > { %v1594_v48 = vpop.f32.mrf.mxu0  ;;  %v1920_v24 = vadd.f32 %v1896_v19, %v3500_v35  ;;  %v1897_v47 = vmul.f32 0.044715, %v1873_v13  ;;  %v1880_v15 = vmul.f32 %v1856_v38, %v3524_v29  ;;  %v3546_v1 = vadd.f32 %v1675_v45, %v3492_v41 }
 0x2f6   : > { %v1677_v12 = vpop.f32.mrf.mxu1  ;;  %v1902_v55 = vmul.f32 0.044715, %v1878_v57  ;;  %v1942_v44 = vmul.f32 0.7978846, %v1918_v26  ;;  %v1919_v18 = vadd.f32 %v1895_v34, %v3507_v43  ;;  %v1855_v33 = vmul.f32 %v3535_v54, %v3535_v54 }
 0x2f7   : > { %v1746_v30 = vpop.f32.mrf.mxu0  ;;  %v3552_v11 = vadd.f32 %v1594_v48, %v3492_v41  ;;  %v3555_v42 = vadd.f32 %v1677_v12, %v3492_v41  ;;  %v1944_v56 = vmul.f32 0.7978846, %v1920_v24  ;;  %v1862_v8 = vmul.f32 %v3543_v63, %v3543_v63 }
 0x2f8   : > { %v1829_v5 = vpop.f32.mrf.mxu1  ;;  %v1921_v46 = vadd.f32 %v1897_v47, %v3512_v60  ;;  %v1926_v7 = vadd.f32 %v1902_v55, %v3518_v32  ;;  %v1904_v27 = vmul.f32 0.044715, %v1880_v15  ;;  %v1864_v51 = vmul.f32 %v3546_v1, %v3546_v1 }
 0x2f9   : > { %v1748_v52 = vpop.f32.mrf.mxu0  ;;  %2715 = vtanh.f32 %v1942_v44  ;;  %v1857_v62 = vmul.f32 %v3540_v23, %v3540_v23  ;;  %v1886_v28 = vmul.f32 %v1862_v8, %v3543_v63  ;;  %v1863_v37 = vmul.f32 %v3552_v11, %v3552_v11 }
 0x2fa   : > { %v3568_v22 = vmul.f32 0.7978846, %v1919_v18  ;;  %v1879_v31 = vmul.f32 %v1855_v33, %v3535_v54  ;;  %v1888_v61 = vmul.f32 %v1864_v51, %v3546_v1  ;;  %v1865_v4 = vmul.f32 %v3555_v42, %v3555_v42  ;;  %v1831_v36 = vpop.f32.mrf.mxu1 }
 0x2fb   : > { %v1910_v10 = vmul.f32 0.044715, %v1886_v28  ;;  %v1887_v20 = vmul.f32 %v1863_v37, %v3552_v11  ;;  %v3576_v21 = vadd.f32 %v1746_v30, %v3494_v0  ;;  %v3579_v14 = vadd.f32 %v1829_v5, %v3494_v0  ;;  %v1752_v53 = vpop.f32.mrf.mxu0 }
 0x2fc   : > { %v1950_v9 = vmul.f32 0.7978846, %v1926_v7  ;;  %v1928_v40 = vadd.f32 %v1904_v27, %v3524_v29  ;;  %v1912_v50 = vmul.f32 0.044715, %v1888_v61  ;;  %v1889_v25 = vmul.f32 %v1865_v4, %v3555_v42  ;;  %v1835_v13 = vpop.f32.mrf.mxu1 }
 0x2fd   : > { %v1881_v39 = vmul.f32 %v1857_v62, %v3540_v23  ;;  %v1934_v49 = vadd.f32 %v1910_v10, %v3543_v63  ;;  %v1911_v2 = vmul.f32 0.044715, %v1887_v20  ;;  %v1850_v17 = vmul.f32 %v3576_v21, %v3576_v21  ;;  %v1754_v26 = vpop.f32.mrf.mxu0 }
 0x2fe   : > { %v1903_v58 = vmul.f32 0.044715, %v1879_v31  ;;  %v1936_v3 = vadd.f32 %v1912_v50, %v3546_v1  ;;  %v1913_v19 = vmul.f32 0.044715, %v1889_v25  ;;  %v1852_v45 = vmul.f32 %v3579_v14, %v3579_v14  ;;  %v1837_v33 = vpop.f32.mrf.mxu1 }
 0x2ff   : > { %2717 = vtanh.f32 %v1944_v56  ;;  %v1958_v57 = vmul.f32 0.7978846, %v1934_v49  ;;  %v1935_v38 = vadd.f32 %v1911_v2, %v3552_v11  ;;  %v1874_v48 = vmul.f32 %v1850_v17, %v3576_v21  ;;  %v1758_v7 = vpop.f32.mrf.mxu0 }
 0x300   : > { %2719 = vtanh.f32 %v1950_v9  ;;  %v1960_v34 = vmul.f32 0.7978846, %v1936_v3  ;;  %v1937_v12 = vadd.f32 %v1913_v19, %v3555_v42  ;;  %v1876_v24 = vmul.f32 %v1852_v45, %v3579_v14 }
 0x301   : > { %v1952_v30 = vmul.f32 0.7978846, %v1928_v40  ;;  %v1905_v47 = vmul.f32 0.044715, %v1881_v39  ;;  %2721 = vtanh.f32 %v1958_v57  ;;  %v1959_v55 = vmul.f32 0.7978846, %v1935_v38  ;;  %v1760_v9 = vpop.f32.mrf.mxu0 }
 0x302   : > { %v1927_v15 = vadd.f32 %v1903_v58, %v3535_v54  ;;  %2723 = vtanh.f32 %v1960_v34  ;;  %v1961_v44 = vmul.f32 0.7978846, %v1937_v12  ;;  %v3596_v18 = vadd.f32 %v1748_v52, %v3494_v0 }
 0x303   : > { %v3598_v5 = vmul.f32 0.7978846, %v1921_v46  ;;  %2725 = vtanh.f32 %v1959_v55  ;;  %v1898_v56 = vmul.f32 0.044715, %v1874_v48  ;;  %v3601_v8 = vadd.f32 %v1752_v53, %v3502_v6 }
 0x304   : > { %2727 = vtanh.f32 %v1961_v44  ;;  %v1900_v27 = vmul.f32 0.044715, %v1876_v24  ;;  %v3604_v51 = vadd.f32 %v1831_v36, %v3494_v0  ;;  %v3607_v62 = vadd.f32 %v1835_v13, %v3502_v6  ;;  %v1841_v36 = vpop.f32.mrf.mxu1 }
 0x305   : > { %2729 = vtanh.f32 %v1952_v30  ;;  %v1929_v52 = vadd.f32 %v1905_v47, %v3540_v23  ;;  %v3611_v46 = vmul.f32 0.5, %v3543_v63  ;;  %v1858_v28 = vmul.f32 %v3601_v8, %v3601_v8 }
 0x306   : > { %v3615_v37 = vpop.eup %2715  ;;  %v3617_v31 = vmul.f32 0.7978846, %v1927_v15  ;;  %v3620_v61 = vmul.f32 0.5, %v3546_v1  ;;  %v1851_v0 = vmul.f32 %v3596_v18, %v3596_v18  ;;  %v1860_v4 = vmul.f32 %v3607_v62, %v3607_v62  ;;  %v1843_v38 = vpop.f32.mrf.mxu1 }
 0x307   : > { %v3627_v63 = vmul.f32 0.5, %v3552_v11  ;;  %v1922_v10 = vadd.f32 %v1898_v56, %v3576_v21  ;;  %v1882_v20 = vmul.f32 %v1858_v28, %v3601_v8  ;;  %v3632_v53 = vadd.f32 %v1754_v26, %v3502_v6 }
 0x308   : > { %v1924_v1 = vadd.f32 %v1900_v27, %v3579_v14  ;;  %v1853_v40 = vmul.f32 %v3604_v51, %v3604_v51  ;;  %v1884_v50 = vmul.f32 %v1860_v4, %v3607_v62  ;;  %v3639_v25 = vadd.f32 %v1837_v33, %v3502_v6 }
 0x309   : > { %v1906_v11 = vmul.f32 0.044715, %v1882_v20  ;;  %v1859_v39 = vmul.f32 %v3632_v53, %v3632_v53  ;;  %v3644_v49 = vadd.f32 %v1758_v7, %v3492_v41  ;;  %v3647_v2 = vadd.f32 %v1841_v36, %v3492_v41 }
 0x30a   : > { %v1875_v17 = vmul.f32 %v1851_v0, %v3596_v18  ;;  %v1908_v58 = vmul.f32 0.044715, %v1884_v50  ;;  %v1861_v3 = vmul.f32 %v3639_v25, %v3639_v25  ;;  %v3653_v19 = vadd.f32 %v1760_v9, %v3492_v41 }
 0x30b   : > { %v1946_v6 = vmul.f32 0.7978846, %v1922_v10  ;;  %v1930_v45 = vadd.f32 %v1906_v11, %v3601_v8  ;;  %v1883_v13 = vmul.f32 %v1859_v39, %v3632_v53  ;;  %v1866_v57 = vmul.f32 %v3644_v49, %v3644_v49 }
 0x30c   : > { %v3659_v48 = vpop.eup %2717  ;;  %v1948_v26 = vmul.f32 0.7978846, %v1924_v1  ;;  %v1877_v34 = vmul.f32 %v1853_v40, %v3604_v51  ;;  %v1932_v12 = vadd.f32 %v1908_v58, %v3607_v62  ;;  %v1868_v24 = vmul.f32 %v3647_v2, %v3647_v2 }
 0x30d   : > { %v3665_v30 = vpop.eup %2719  ;;  %v1953_v47 = vmul.f32 0.7978846, %v1929_v52  ;;  %v1885_v55 = vmul.f32 %v1861_v3, %v3639_v25  ;;  %v1890_v15 = vmul.f32 %v1866_v57, %v3644_v49  ;;  %v1867_v44 = vmul.f32 %v3653_v19, %v3653_v19 }
 0x30e   : > { %v2722_v33 = vpop.eup %2721  ;;  %v1954_v56 = vmul.f32 0.7978846, %v1930_v45  ;;  %v1907_v7 = vmul.f32 0.044715, %v1883_v13  ;;  %v1892_v27 = vmul.f32 %v1868_v24, %v3647_v2  ;;  %v3673_v28 = vadd.f32 %v1843_v38, %v3492_v41 }
 0x30f   : > { %v2724_v0 = vpop.eup %2723  ;;  %v1985_v4 = vmul.f32 0.5, %v3555_v42  ;;  %2731 = vtanh.f32 %v1946_v6  ;;  %v1899_v52 = vmul.f32 0.044715, %v1875_v17  ;;  %v1914_v36 = vmul.f32 0.044715, %v1890_v15 }
 0x310   : > { %v2726_v10 = vpop.eup %2725  ;;  %2733 = vtanh.f32 %v1948_v26  ;;  %v1901_v20 = vmul.f32 0.044715, %v1877_v34  ;;  %v1956_v9 = vmul.f32 0.7978846, %v1932_v12  ;;  %v1916_v1 = vmul.f32 0.044715, %v1892_v27 }
 0x311   : > { %v2728_v40 = vpop.eup %2727  ;;  %v2030_v50 = vadd.f32 1.0, %v2722_v33  ;;  %v1909_v11 = vmul.f32 0.044715, %v1885_v55  ;;  %v1938_v39 = vadd.f32 %v1914_v36, %v3644_v49  ;;  %v1891_v58 = vmul.f32 %v1867_v44, %v3653_v19 }
 0x312   : > { %v2730_v41 = vpop.eup %2729  ;;  %2735 = vtanh.f32 %v1954_v56  ;;  %v1931_v3 = vadd.f32 %v1907_v7, %v3632_v53  ;;  %v1940_v42 = vadd.f32 %v1916_v1, %v3647_v2  ;;  %v1869_v17 = vmul.f32 %v3673_v28, %v3673_v28 }
 0x313   : > { %v2032_v6 = vadd.f32 1.0, %v2724_v0  ;;  %v1962_v45 = vmul.f32 0.7978846, %v1938_v39  ;;  %v1915_v13 = vmul.f32 0.044715, %v1891_v58  ;;  %v2031_v57 = vadd.f32 1.0, %v2726_v10 }
 0x314   : > { %2737 = vtanh.f32 %v1956_v9  ;;  %v1964_v38 = vmul.f32 0.7978846, %v1940_v42  ;;  %v1893_v26 = vmul.f32 %v1869_v17, %v3673_v28  ;;  %v2033_v34 = vadd.f32 1.0, %v2728_v40 }
 0x315   : > { %v1933_v12 = vadd.f32 %v1909_v11, %v3639_v25  ;;  %2739 = vtanh.f32 %v1962_v45  ;;  %v1939_v24 = vadd.f32 %v1915_v13, %v3653_v19  ;;  %v2055_v55 = vmul.f32 %v2031_v57, %v3627_v63 }
 0x316   : > { %v2054_v15 = vmul.f32 %v2030_v50, %v3611_v46  ;;  %2741 = vtanh.f32 %v1964_v38  ;;  %v1917_v44 = vmul.f32 0.044715, %v1893_v26  ;;  %v2057_v33 = vmul.f32 %v2033_v34, %v1985_v4 }
 0x317   : > { %v2056_v56 = vmul.f32 %v2032_v6, %v3620_v61  ;;  %v1923_v7 = vadd.f32 %v1899_v52, %v3596_v18  ;;  %v1963_v27 = vmul.f32 0.7978846, %v1939_v24  ;;  %2564 = vmatprep.subr.msk.mxu0 %vm296_vm0, %v2055_v55  ;;  %2743 = vtanh.f32 %v3617_v31 }
 0x318   : > { %v1925_v0 = vadd.f32 %v1901_v20, %v3604_v51  ;;  %v1941_v36 = vadd.f32 %v1917_v44, %v3673_v28  ;;  %2567 = vmatprep.subr.msk.mxu1 %vm296_vm0, %v2057_v33  ;;  %2565 = vmatpush1.msk.msra.mxu0 %vm296_vm0, %v2054_v15  ;;  %2745 = vtanh.f32 %v1953_v47  ;;  %v1955_v46 = vmul.f32 0.7978846, %v1931_v3 }
 0x319   : > { %2747 = vtanh.f32 %v1963_v27  ;;  %2568 = vmatpush1.msk.msra.mxu1 %vm296_vm0, %v2056_v56  ;;  %v1957_v61 = vmul.f32 0.7978846, %v1933_v12  ;;  %v1947_v4 = vmul.f32 0.7978846, %v1923_v7  ;;  %v1966_v40 = vmul.f32 0.5, %v3497_v59 }
 0x31a   : > { %v1965_v63 = vmul.f32 0.7978846, %v1941_v36  ;;  %2749 = vtanh.f32 %v3568_v22  ;;  %v1949_v52 = vmul.f32 0.7978846, %v1925_v0  ;;  %v1968_v22 = vmul.f32 0.5, %v3500_v35 }
 0x31b   : > { %2751 = vtanh.f32 %v3598_v5  ;;  %v1974_v5 = vmul.f32 0.5, %v3518_v32  ;;  %v2022_v11 = vadd.f32 1.0, %v3665_v30  ;;  %v1967_v39 = vmul.f32 0.5, %v3507_v43 }
 0x31c   : > { %v3698_v31 = vpop.eup %2731  ;;  %2753 = vtanh.f32 %v1965_v63  ;;  %v1969_v58 = vmul.f32 0.5, %v3512_v60  ;;  %v1976_v42 = vmul.f32 0.5, %v3524_v29  ;;  %v1975_v17 = vmul.f32 0.5, %v3535_v54 }
 0x31d   : > { %v3700_v10 = vpop.eup %2733  ;;  %2755 = vtanh.f32 %v1955_v46  ;;  %v2024_v45 = vadd.f32 1.0, %v2730_v41  ;;  %v3711_v59 = vmul.f32 0.5, %v3601_v8  ;;  %v3714_v35 = vmul.f32 0.5, %v3607_v62  ;;  %v2062_v46 = vld [vmem:[%s3764_s3] sm:$0x1] }
 0x31e   : > { %2757 = vtanh.f32 %v1957_v61  ;;  %v1977_v32 = vmul.f32 0.5, %v3540_v23  ;;  %v1987_v60 = vmul.f32 0.5, %v3653_v19  ;;  %v2014_v29 = vadd.f32 1.0, %v3615_v37 }
 0x31f   : > { %v2736_v47 = vpop.eup %2735  ;;  %2759 = vtanh.f32 %v1947_v4  ;;  %v2046_v41 = vmul.f32 %v2022_v11, %v1974_v5  ;;  %v2016_v8 = vadd.f32 1.0, %v3659_v48  ;;  %v1986_v62 = vmul.f32 0.5, %v3644_v49 }
 0x320   : > { %2761 = vtanh.f32 %v1949_v52  ;;  %v1989_v24 = vmul.f32 0.5, %v3673_v28  ;;  %v2048_v23 = vmul.f32 %v2024_v45, %v1976_v42  ;;  %v2038_v48 = vmul.f32 %v2014_v29, %v1966_v40 }
 0x321   : > { %v2738_v20 = vpop.eup %2737  ;;  %v2040_v49 = vmul.f32 %v2016_v8, %v1968_v22  ;;  %v2026_v63 = vadd.f32 1.0, %v2736_v47  ;;  %v1988_v52 = vmul.f32 0.5, %v3647_v2  ;;  %v1981_v22 = vmul.f32 0.5, %v3639_v25 }
 0x322   : > { %v2740_v9 = vpop.eup %2739  ;;  %v2018_v11 = vadd.f32 1.0, %v3698_v31  ;;  %v1971_v47 = vmul.f32 0.5, %v3596_v18  ;;  %v1973_v31 = vmul.f32 0.5, %v3604_v51  ;;  %v2794_v51 = vmov 1966171168  }
 0x323   : > { %v2742_v1 = vpop.eup %2741  ;;  %v2034_v19 = vadd.f32 1.0, %v2740_v9  ;;  %v1979_v9 = vmul.f32 0.5, %v3632_v53  ;;  %v2020_v53 = vadd.f32 1.0, %v3700_v10 }
 0x324   : > { %v2744_v50 = vpop.eup %2743  ;;  %v2036_v7 = vadd.f32 1.0, %v2742_v1  ;;  %v2028_v1 = vadd.f32 1.0, %v2738_v20  ;;  %v1970_v20 = vmul.f32 0.5, %v3576_v21 }
 0x325   : > { %v2746_v3 = vpop.eup %2745  ;;  %v2023_v6 = vadd.f32 1.0, %v2744_v50  ;;  %v2058_v50 = vmul.f32 %v2034_v19, %v1986_v62 }
 0x326   : > { %v2748_v13 = vpop.eup %2747  ;;  %v2025_v30 = vadd.f32 1.0, %v2746_v3  ;;  %v1972_v3 = vmul.f32 0.5, %v3579_v14  ;;  %v2052_v18 = vmul.f32 %v2028_v1, %v3714_v35  ;;  %v2042_v10 = vmul.f32 %v2018_v11, %v1970_v20 }
 0x327   : > { %v2750_v43 = vpop.eup %2749  ;;  %v2047_v57 = vmul.f32 %v2023_v6, %v1975_v17  ;;  %v2035_v38 = vadd.f32 1.0, %v2748_v13  ;;  %v2394_v14 = vlaneseq  ;;  %v2392_v6 = vunpack.c.l.s4 %v2794_v51  ;;  %v2066_v13 = vpop.permute.xlu1 %2065 }
 0x328   : > { %v2752_v54 = vpop.eup %2751  ;;  %v2049_v26 = vmul.f32 %v2025_v30, %v1977_v32  ;;  %v2015_v34 = vadd.f32 1.0, %v2750_v43  ;;  %v2044_v17 = vmul.f32 %v2020_v53, %v1972_v3 }
 0x329   : > { %v2754_v12 = vpop.eup %2753  ;;  %2123 = vmatprep.subr.mxu0 %v2047_v57  ;;  %v2017_v55 = vadd.f32 1.0, %v2752_v54  ;;  %v2059_v44 = vmul.f32 %v2035_v38, %v1987_v60  ;;  %v2395_v32 = vshrl.u32 %v2394_v14, 7  ;;  %v2393_v29 = vunpack.c.0.s8 %v2392_v6 }
 0x32a   : > { %v2756_v15 = vpop.eup %2755  ;;  %2194 = vmatprep.subr.mxu1 %v2049_v26  ;;  %2124 = vmatpush1.msra.mxu0 %v2046_v41  ;;  %v2039_v37 = vmul.f32 %v2015_v34, %v1967_v39  ;;  %v2037_v33 = vadd.f32 1.0, %v2754_v12  ;;  %v2060_v39 = vmul.f32 %v2036_v7, %v1988_v52 }
 0x32b   : > { %v2758_v56 = vpop.eup %2757  ;;  %2195 = vmatpush1.msra.mxu1 %v2048_v23  ;;  %v2041_v27 = vmul.f32 %v2017_v55, %v1969_v58  ;;  %v2027_v0 = vadd.f32 1.0, %v2756_v15  ;;  %v2050_v58 = vmul.f32 %v2026_v63, %v3711_v59  ;;  %v2396_v41 = vsub.s32 %v2393_v29, %v2395_v32 }
 0x32c   : > { %v2760_v36 = vpop.eup %2759  ;;  %2125 = vmatprep.subr.mxu0 %v2039_v37  ;;  %v2061_v28 = vmul.f32 %v2037_v33, %v1989_v24  ;;  %v2029_v61 = vadd.f32 1.0, %v2758_v56 }
 0x32d   : > { %v2762_v4 = vpop.eup %2761  ;;  %2196 = vmatprep.subr.mxu1 %v2041_v27  ;;  %2126 = vmatpush1.msra.mxu0 %v2038_v48  ;;  %v2019_v40 = vadd.f32 1.0, %v2760_v36  ;;  %v2051_v2 = vmul.f32 %v2027_v0, %v1979_v9 }
 0x32e   : > { %2197 = vmatpush1.msra.mxu1 %v2040_v49  ;;  %2570 = vmatprep.subr.msk.mxu0 %vm296_vm0, %v2059_v44  ;;  %v2021_v5 = vadd.f32 1.0, %v2762_v4  ;;  %v2053_v25 = vmul.f32 %v2029_v61, %v1981_v22 }
 0x32f   : > { %2573 = vmatprep.subr.msk.mxu1 %vm296_vm0, %v2061_v28  ;;  %2566 = vmatmul.mubr.msk.f32.vlgmr.msra.gmra.mxu0 %vm887_vm2, %v2062_v46  ;;  %v2043_v42 = vmul.f32 %v2019_v40, %v1971_v47 }
 0x330   : > { %2569 = vmatmul.mubr.msk.f32.vlgmr.msra.gmra.mxu1 %vm887_vm2, %v2062_v46  ;;  %2571 = vmatpush1.msk.msra.mxu0 %vm296_vm0, %v2058_v50  ;;  %v2045_v21 = vmul.f32 %v2021_v5, %v1973_v31 }
 0x331   : > { %2574 = vmatpush1.msk.msra.mxu1 %vm296_vm0, %v2060_v39  ;;  %2265 = vmatprep.subr.mxu0 %v2051_v2 }
 0x332   : > { %2336 = vmatprep.subr.mxu1 %v2053_v25  ;;  %2266 = vmatpush1.msra.mxu0 %v2050_v58 }
 0x333   : > { %2337 = vmatpush1.msra.mxu1 %v2052_v18  ;;  %2267 = vmatprep.subr.mxu0 %v2043_v42 }
 0x334   : > { %2338 = vmatprep.subr.mxu1 %v2045_v21  ;;  %2268 = vmatpush1.msra.mxu0 %v2042_v10 }
 0x335   : > { %2301 = vmatprep.mubr.f32.mxu0 %v2787_v16  ;;  %2339 = vmatpush1.msra.mxu1 %v2044_v17 }
 0x336   : > { %2372 = vmatprep.mubr.f32.mxu1 %v2787_v16  ;;  %2572 = vmatmul.mubr.msk.f32.vlgmr.msra.gmra.mxu0 %vm887_vm2, %v2062_v46 }
 0x337   : > { %2575 = vmatmul.mubr.msk.f32.vlgmr.msra.gmra.mxu1 %vm887_vm2, %v2062_v46 }
 0x3ef   : > { %v2161_v45 = vpop.f32.mrf.mxu0 }
 0x3f0   : > { %v2232_v59 = vpop.f32.mrf.mxu1  ;;  %v2162_v43 = vadd.f32 %v2161_v45, %v2066_v13 }
 0x3f1   : > { %v2163_v35 = vpop.f32.mrf.mxu0  ;;  %v2233_v57 = vadd.f32 %v2232_v59, %v2066_v13 }
 0x3f2   : > { %v2234_v30 = vpop.f32.mrf.mxu1  ;;  %v2164_v60 = vadd.f32 %v2163_v35, %v2066_v13 }
 0x3f3   : > { %v2235_v38 = vadd.f32 %v2234_v30, %v2066_v13 }
 0x3f4   : > { %v2387_v54 = vcombine.low %v2162_v43, %v2164_v60 }
 0x3f5   : > { %v2388_v26 = vcombine.low %v2233_v57, %v2235_v38 }
 0x3f6   : > { %v2303_v16 = vpop.f32.mrf.mxu0  ;;  %v2397_v15 = vrot.slane %v2387_v54, %v2396_v41 }
 0x3f7   : > { %v2374_v34 = vpop.f32.mrf.mxu1  ;;  %v2304_v12 = vadd.f32 %v2303_v16, %v2066_v13  ;;  %v2404_v19 = vrot.slane %v2388_v26, %v2396_v41 }
 0x3f8   : > { %v2305_v8 = vpop.f32.mrf.mxu0  ;;  %v2375_v23 = vadd.f32 %v2374_v34, %v2066_v13 }
 0x3f9   : > { %v2306_v62 = vadd.f32 %v2305_v8, %v2066_v13  ;;  %v2376_v24 = vpop.f32.mrf.mxu1  ;;  %v2419_v7 = vcombine.low %v2397_v15, %v2404_v19 }
 0x3fa   : > { %v2377_v55 = vadd.f32 %v2376_v24, %v2066_v13 }
 0x3fb   : > { %v2389_v37 = vcombine.low %v2304_v12, %v2306_v62  ;;  %v2427_v48 = vrot.slane %v2419_v7, %v2396_v41 }
 0x3fc   : > { %v2390_v44 = vcombine.low %v2375_v23, %v2377_v55 }
 0x3fd   : > { %v2411_v33 = vrot.slane %v2389_v37, %v2396_v41 }
 0x3fe   : > { %v2418_v56 = vrot.slane %v2390_v44, %v2396_v41 }
 0x400   : > { %v2420_v27 = vcombine.low %v2411_v33, %v2418_v56 }
 0x402   : > { %v2434_v0 = vrot.slane %v2420_v27, %v2396_v41 }
 0x404   : > { %v2435_v36 = vcombine.low %v2427_v48, %v2434_v0 }
 0x406   : > { %2437 = vst [vmem:[%s246_s18] sm:$0xff] %v2435_v36 }
 0x407 PF: > { %p11_p9 = scmp.ge.s32.totalorder %s2837_s19, 4   ;;  %s3766_s15 = smov %s2781_s16 }
 0x408   : > { %s3767_s16 = smov %s2846_s22  ;;  %s3768_s17 = smov %s2837_s19 }
 0x409   :  { %13 = sbr.rel (!%p11_p9) target bundleno = 2 (0x2), region = 94 }

</bundles_post_ra>
